<compile_context>
chip_gen: v5e
topology: v5e:2x2
jax: 0.10.0
libtpu: 0.0.40
codegen_flags: <defaults>
</compile_context>

<pallas_src>
import functools

import jax
import jax.numpy as jnp
from jax.experimental import pallas as pl
from jax.experimental.pallas import tpu as pltpu


def _round_up(a, b):
    return (a + b - 1) // b * b


def _residual_block_kernel(xc_ref, xtop_ref, xbot_ref, w1_ref, w2_ref, o_ref,
                           xflat_ref, *, TH, W, Wp, Cin, Crh, Cout, cdt):
    """Fused ReLU -> 3x3 conv -> ReLU -> 1x1 conv -> +x for one (batch, row-tile).

    xc_ref    : (1, TH, W, Cin)        center rows of this tile (NHWC)
    xtop_ref  : (1, 1, W, Cin)         row above the tile (clamped at the image top)
    xbot_ref  : (1, 1, W, Cin)         row below the tile (clamped at the image bottom)
    w1_ref    : (9, Cin, Crh)          3x3 weights, tap-major (ky*3+kx)
    w2_ref    : (Crh, Cout)            1x1 weights
    o_ref     : (1, TH, W, Cout)       output tile
    xflat_ref : ((TH+2)*Wp + 8, Cin)   flat padded-width ReLU(x) scratch (bf16)
    """
    t = pl.program_id(1)
    n_t = pl.num_programs(1)
    f32 = jnp.float32

    # ---- fill the flat, padded-width scratch ---------------------------------
    # Flat rows [r*Wp, (r+1)*Wp) hold padded row r of the (TH+2, Wp) halo tile:
    #   col 0          : left zero padding
    #   cols [1, W+1)  : ReLU(x) image columns
    #   cols [W+1, Wp) : right zero padding + sublane-alignment slack
    # Only these thin border strips are zeroed (no full-scratch memset), every step,
    # so correctness never depends on stale scratch contents or on program_id == 0.
    zrow = jnp.zeros((1, Cin), cdt)
    zpad = jnp.zeros((Wp - (W + 1), Cin), cdt)
    for r in range(TH + 2):
        base = r * Wp                                     # static offsets
        xflat_ref[pl.ds(base, 1), :] = zrow
        xflat_ref[pl.ds(base + W + 1, Wp - (W + 1)), :] = zpad
    # slack tail (only ever feeds discarded output columns; zero for NaN safety)
    xflat_ref[pl.ds((TH + 2) * Wp, 8), :] = jnp.zeros((8, Cin), cdt)

    # First ReLU, applied exactly once, in f32; bf16 only for the MXU operands.
    xc = xc_ref[0].astype(f32)                            # (TH, W, Cin), pre-ReLU kept
    xc_relu = jnp.maximum(xc, 0.0)

    # Halo rows: zero them at the true image top/bottom (the clamped fetch is dummy).
    top = jnp.maximum(xtop_ref[0, 0].astype(f32), 0.0) * (t > 0).astype(f32)
    bot = jnp.maximum(xbot_ref[0, 0].astype(f32), 0.0) * (t < n_t - 1).astype(f32)
    xflat_ref[pl.ds(1, W), :] = top.astype(cdt)
    xflat_ref[pl.ds((TH + 1) * Wp + 1, W), :] = bot.astype(cdt)
    for h in range(TH):
        xflat_ref[pl.ds((h + 1) * Wp + 1, W), :] = xc_relu[h].astype(cdt)

    # ---- 3x3 conv: 9 accumulated tap matmuls on the flat operand -------------
    # Each tap is one contiguous row slice (static start ky*Wp+kx) -> no im2col
    # repack, no per-tap reshape.  Columns [W, Wp) of the result are garbage and
    # are dropped below.
    M = TH * Wp
    acc = jnp.zeros((M, Crh), f32)
    for ky in range(3):
        for kx in range(3):
            tap = xflat_ref[pl.ds(ky * Wp + kx, M), :]    # (M, Cin) bf16
            acc = acc + jnp.dot(tap, w1_ref[ky * 3 + kx],
                                preferred_element_type=f32)

    # ---- second ReLU + 1x1 conv + residual ------------------------------------
    h1 = jnp.maximum(acc, 0.0).astype(cdt)                # (M, Crh)
    y = jnp.dot(h1, w2_ref[...], preferred_element_type=f32)     # (M, Cout) f32
    y = y.reshape(TH, Wp, Cout)[:, :W, :]                 # drop pad/slack columns
    o_ref[0] = (xc + y).astype(o_ref.dtype)               # residual uses pre-ReLU x


def residual_block_forward(x_nchw, w1_oihw, w2_oihw, *, tile_h=8,
                           compute_dtype=jnp.bfloat16):
    """ResidualBlock forward. x: (N, C, H, W) NCHW; weights in PyTorch OIHW layout."""
    N, Cin, H, W = x_nchw.shape
    Crh = w1_oihw.shape[0]          # num_residual_hiddens
    Cout = w2_oihw.shape[0]         # num_hiddens
    assert Cout == Cin, "residual add requires in_channels == num_hiddens"

    TH = tile_h if (H % tile_h == 0) else H               # row-tile size
    Wp = _round_up(W + 2, 8)                              # padded+aligned row width

    # NCHW -> NHWC so channels sit on the TPU lane axis.
    x_nhwc = jnp.transpose(x_nchw, (0, 2, 3, 1)).astype(jnp.float32)

    # 3x3 weight: OIHW -> (ky, kx, Cin, Crh) -> (9, Cin, Crh), tap-major (ky*3+kx).
    w1_taps = jnp.transpose(w1_oihw, (2, 3, 1, 0)).reshape(9, Cin, Crh)
    w1_taps = w1_taps.astype(compute_dtype)
    # 1x1 weight: (Cout, Crh, 1, 1) -> (Crh, Cout).
    w2_mat = jnp.transpose(w2_oihw[:, :, 0, 0], (1, 0)).astype(compute_dtype)

    kernel = functools.partial(_residual_block_kernel, TH=TH, W=W, Wp=Wp,
                               Cin=Cin, Crh=Crh, Cout=Cout, cdt=compute_dtype)

    out_nhwc = pl.pallas_call(
        kernel,
        out_shape=jax.ShapeDtypeStruct((N, H, W, Cout), jnp.float32),
        grid_spec=pltpu.PrefetchScalarGridSpec(
            num_scalar_prefetch=0,
            grid=(N, H // TH),                            # batch x row-tiles
            in_specs=[
                # center rows of this tile
                pl.BlockSpec((1, TH, W, Cin), lambda n, t: (n, t, 0, 0)),
                # 1-row top / bottom halos (block row size 1 => block idx == row idx);
                # clamped at the image edge, zeroed in-kernel there.
                pl.BlockSpec((1, 1, W, Cin),
                             lambda n, t: (n, jnp.maximum(t * TH - 1, 0), 0, 0)),
                pl.BlockSpec((1, 1, W, Cin),
                             lambda n, t: (n, jnp.minimum((t + 1) * TH, H - 1), 0, 0)),
                pl.BlockSpec((9, Cin, Crh), lambda n, t: (0, 0, 0)),
                pl.BlockSpec((Crh, Cout), lambda n, t: (0, 0)),
            ],
            out_specs=pl.BlockSpec((1, TH, W, Cout), lambda n, t: (n, t, 0, 0)),
            scratch_shapes=[
                pltpu.VMEM(((TH + 2) * Wp + 8, Cin), compute_dtype),
            ],
        ),
        compiler_params=pltpu.CompilerParams(
            dimension_semantics=("parallel", "parallel"),  # megacore-shardable steps
            vmem_limit_bytes=64 * 1024 * 1024,
        ),
    )(x_nhwc, x_nhwc, x_nhwc, w1_taps, w2_mat)

    return jnp.transpose(out_nhwc, (0, 3, 1, 2))          # NHWC -> NCHW


def _residual_block_reference(x_nchw, w1_oihw, w2_oihw):
    """Pure-JAX reference of the PyTorch module forward (for correctness check)."""
    xr = jnp.maximum(x_nchw, 0.0)
    h = jax.lax.conv_general_dilated(
        xr, w1_oihw, window_strides=(1, 1), padding=((1, 1), (1, 1)),
        dimension_numbers=("NCHW", "OIHW", "NCHW"),
        precision=jax.lax.Precision.HIGHEST)
    h = jnp.maximum(h, 0.0)
    y = jax.lax.conv_general_dilated(
        h, w2_oihw, window_strides=(1, 1), padding="VALID",
        dimension_numbers=("NCHW", "OIHW", "NCHW"),
        precision=jax.lax.Precision.HIGHEST)
    return x_nchw + y


if __name__ == "__main__":
    # Small demo shapes consistent with the module (in_channels must equal num_hiddens
    # for the residual add). Real VQ-VAE-2 width is 128 (exactly lane-dense); 32 keeps
    # the demo small.
    batch = 2
    num_hiddens = 32            # == in_channels
    num_residual_hiddens = 16
    H = W = 16

    key = jax.random.PRNGKey(0)
    k_x, k_w1, k_w2 = jax.random.split(key, 3)

    x = jax.random.normal(k_x, (batch, num_hiddens, H, W), jnp.float32)

    # PyTorch default Conv2d init (kaiming_uniform_ with a=sqrt(5)) => U(+-1/sqrt(fan_in)).
    fan1 = num_hiddens * 9
    w1 = jax.random.uniform(k_w1, (num_residual_hiddens, num_hiddens, 3, 3),
                            jnp.float32, -1.0 / fan1 ** 0.5, 1.0 / fan1 ** 0.5)
    fan2 = num_residual_hiddens
    w2 = jax.random.uniform(k_w2, (num_hiddens, num_residual_hiddens, 1, 1),
                            jnp.float32, -1.0 / fan2 ** 0.5, 1.0 / fan2 ** 0.5)

    out = jax.jit(residual_block_forward)(x, w1, w2)
    out = jax.block_until_ready(out)

    assert out.shape == (batch, num_hiddens, H, W), out.shape
    assert out.dtype == jnp.float32
    assert bool(jnp.all(jnp.isfinite(out)))

    ref = _residual_block_reference(x, w1, w2)
    max_err = float(jnp.max(jnp.abs(out - ref)))
    # bf16 MXU operands (f32 accumulation / residual): expect ~1e-3 level error.
    assert max_err < 3e-2, f"mismatch vs reference: max abs err = {max_err}"

    print("KERNEL_OK")
</pallas_src>

<mosaic_0001>
module attributes {stable_mosaic.version = 11 : i64} {
  func.func @_residual_block_kernel(%arg0: i32, %arg1: i32, %arg2: memref<1x8x16x32xf32, #tpu.memory_space<vmem>>, %arg3: memref<1x1x16x32xf32, #tpu.memory_space<vmem>>, %arg4: memref<1x1x16x32xf32, #tpu.memory_space<vmem>>, %arg5: memref<9x32x16xbf16, #tpu.memory_space<vmem>>, %arg6: memref<16x32xbf16, #tpu.memory_space<vmem>>, %arg7: memref<1x8x16x32xf32, #tpu.memory_space<vmem>>, %arg8: memref<248x32xbf16, #tpu.memory_space<vmem>>) attributes {dimension_semantics = [#tpu.dimension_semantics<parallel>, #tpu.dimension_semantics<parallel>], iteration_bounds = array<i64: 2, 2>, scalar_prefetch = 0 : i64, scratch_operands = 1 : i64, tpu.core_type = #tpu.core_type<tc>, window_params = [{transform_indices = @transform_0, window_bounds = array<i64: 1, 8, 16, 32>}, {transform_indices = @transform_1, window_bounds = array<i64: 1, 1, 16, 32>}, {transform_indices = @transform_2, window_bounds = array<i64: 1, 1, 16, 32>}, {pipeline_mode = #tpu.pipeline_mode<synchronous>, transform_indices = @transform_3, window_bounds = array<i64: 9, 32, 16>}, {pipeline_mode = #tpu.pipeline_mode<synchronous>, transform_indices = @transform_4, window_bounds = array<i64: 16, 32>}, {transform_indices = @transform_5, window_bounds = array<i64: 1, 8, 16, 32>}]} {
    %cst = arith.constant 0.000000e+00 : bf16
    %0 = vector.broadcast %cst : bf16 to vector<1x32xbf16>
    %cst_0 = arith.constant 0.000000e+00 : bf16
    %1 = vector.broadcast %cst_0 : bf16 to vector<7x32xbf16>
    %c0 = arith.constant 0 : index
    %c0_1 = arith.constant 0 : index
    %2 = vector.load %arg8[%c0, %c0_1] : memref<248x32xbf16, #tpu.memory_space<vmem>>, vector<1x32xbf16>
    tpu.vector_store %arg8[%c0, %c0_1], %0 {strides = array<i32>} : memref<248x32xbf16, #tpu.memory_space<vmem>>, vector<1x32xbf16>,
    %c17 = arith.constant 17 : index
    %c0_2 = arith.constant 0 : index
    %3 = vector.load %arg8[%c17, %c0_2] : memref<248x32xbf16, #tpu.memory_space<vmem>>, vector<7x32xbf16>
    tpu.vector_store %arg8[%c17, %c0_2], %1 {strides = array<i32>} : memref<248x32xbf16, #tpu.memory_space<vmem>>, vector<7x32xbf16>,
    %c24 = arith.constant 24 : index
    %c0_3 = arith.constant 0 : index
    %4 = vector.load %arg8[%c24, %c0_3] : memref<248x32xbf16, #tpu.memory_space<vmem>>, vector<1x32xbf16>
    tpu.vector_store %arg8[%c24, %c0_3], %0 {strides = array<i32>} : memref<248x32xbf16, #tpu.memory_space<vmem>>, vector<1x32xbf16>,
    %c41 = arith.constant 41 : index
    %c0_4 = arith.constant 0 : index
    %5 = vector.load %arg8[%c41, %c0_4] : memref<248x32xbf16, #tpu.memory_space<vmem>>, vector<7x32xbf16>
    tpu.vector_store %arg8[%c41, %c0_4], %1 {strides = array<i32>} : memref<248x32xbf16, #tpu.memory_space<vmem>>, vector<7x32xbf16>,
    %c48 = arith.constant 48 : index
    %c0_5 = arith.constant 0 : index
    %6 = vector.load %arg8[%c48, %c0_5] : memref<248x32xbf16, #tpu.memory_space<vmem>>, vector<1x32xbf16>
    tpu.vector_store %arg8[%c48, %c0_5], %0 {strides = array<i32>} : memref<248x32xbf16, #tpu.memory_space<vmem>>, vector<1x32xbf16>,
    %c65 = arith.constant 65 : index
    %c0_6 = arith.constant 0 : index
    %7 = vector.load %arg8[%c65, %c0_6] : memref<248x32xbf16, #tpu.memory_space<vmem>>, vector<7x32xbf16>
    tpu.vector_store %arg8[%c65, %c0_6], %1 {strides = array<i32>} : memref<248x32xbf16, #tpu.memory_space<vmem>>, vector<7x32xbf16>,
    %c72 = arith.constant 72 : index
    %c0_7 = arith.constant 0 : index
    %8 = vector.load %arg8[%c72, %c0_7] : memref<248x32xbf16, #tpu.memory_space<vmem>>, vector<1x32xbf16>
    tpu.vector_store %arg8[%c72, %c0_7], %0 {strides = array<i32>} : memref<248x32xbf16, #tpu.memory_space<vmem>>, vector<1x32xbf16>,
    %c89 = arith.constant 89 : index
    %c0_8 = arith.constant 0 : index
    %9 = vector.load %arg8[%c89, %c0_8] : memref<248x32xbf16, #tpu.memory_space<vmem>>, vector<7x32xbf16>
    tpu.vector_store %arg8[%c89, %c0_8], %1 {strides = array<i32>} : memref<248x32xbf16, #tpu.memory_space<vmem>>, vector<7x32xbf16>,
    %c96 = arith.constant 96 : index
    %c0_9 = arith.constant 0 : index
    %10 = vector.load %arg8[%c96, %c0_9] : memref<248x32xbf16, #tpu.memory_space<vmem>>, vector<1x32xbf16>
    tpu.vector_store %arg8[%c96, %c0_9], %0 {strides = array<i32>} : memref<248x32xbf16, #tpu.memory_space<vmem>>, vector<1x32xbf16>,
    %c113 = arith.constant 113 : index
    %c0_10 = arith.constant 0 : index
    %11 = vector.load %arg8[%c113, %c0_10] : memref<248x32xbf16, #tpu.memory_space<vmem>>, vector<7x32xbf16>
    tpu.vector_store %arg8[%c113, %c0_10], %1 {strides = array<i32>} : memref<248x32xbf16, #tpu.memory_space<vmem>>, vector<7x32xbf16>,
    %c120 = arith.constant 120 : index
    %c0_11 = arith.constant 0 : index
    %12 = vector.load %arg8[%c120, %c0_11] : memref<248x32xbf16, #tpu.memory_space<vmem>>, vector<1x32xbf16>
    tpu.vector_store %arg8[%c120, %c0_11], %0 {strides = array<i32>} : memref<248x32xbf16, #tpu.memory_space<vmem>>, vector<1x32xbf16>,
    %c137 = arith.constant 137 : index
    %c0_12 = arith.constant 0 : index
    %13 = vector.load %arg8[%c137, %c0_12] : memref<248x32xbf16, #tpu.memory_space<vmem>>, vector<7x32xbf16>
    tpu.vector_store %arg8[%c137, %c0_12], %1 {strides = array<i32>} : memref<248x32xbf16, #tpu.memory_space<vmem>>, vector<7x32xbf16>,
    %c144 = arith.constant 144 : index
    %c0_13 = arith.constant 0 : index
    %14 = vector.load %arg8[%c144, %c0_13] : memref<248x32xbf16, #tpu.memory_space<vmem>>, vector<1x32xbf16>
    tpu.vector_store %arg8[%c144, %c0_13], %0 {strides = array<i32>} : memref<248x32xbf16, #tpu.memory_space<vmem>>, vector<1x32xbf16>,
    %c161 = arith.constant 161 : index
    %c0_14 = arith.constant 0 : index
    %15 = vector.load %arg8[%c161, %c0_14] : memref<248x32xbf16, #tpu.memory_space<vmem>>, vector<7x32xbf16>
    tpu.vector_store %arg8[%c161, %c0_14], %1 {strides = array<i32>} : memref<248x32xbf16, #tpu.memory_space<vmem>>, vector<7x32xbf16>,
    %c168 = arith.constant 168 : index
    %c0_15 = arith.constant 0 : index
    %16 = vector.load %arg8[%c168, %c0_15] : memref<248x32xbf16, #tpu.memory_space<vmem>>, vector<1x32xbf16>
    tpu.vector_store %arg8[%c168, %c0_15], %0 {strides = array<i32>} : memref<248x32xbf16, #tpu.memory_space<vmem>>, vector<1x32xbf16>,
    %c185 = arith.constant 185 : index
    %c0_16 = arith.constant 0 : index
    %17 = vector.load %arg8[%c185, %c0_16] : memref<248x32xbf16, #tpu.memory_space<vmem>>, vector<7x32xbf16>
    tpu.vector_store %arg8[%c185, %c0_16], %1 {strides = array<i32>} : memref<248x32xbf16, #tpu.memory_space<vmem>>, vector<7x32xbf16>,
    %c192 = arith.constant 192 : index
    %c0_17 = arith.constant 0 : index
    %18 = vector.load %arg8[%c192, %c0_17] : memref<248x32xbf16, #tpu.memory_space<vmem>>, vector<1x32xbf16>
    tpu.vector_store %arg8[%c192, %c0_17], %0 {strides = array<i32>} : memref<248x32xbf16, #tpu.memory_space<vmem>>, vector<1x32xbf16>,
    %c209 = arith.constant 209 : index
    %c0_18 = arith.constant 0 : index
    %19 = vector.load %arg8[%c209, %c0_18] : memref<248x32xbf16, #tpu.memory_space<vmem>>, vector<7x32xbf16>
    tpu.vector_store %arg8[%c209, %c0_18], %1 {strides = array<i32>} : memref<248x32xbf16, #tpu.memory_space<vmem>>, vector<7x32xbf16>,
    %c216 = arith.constant 216 : index
    %c0_19 = arith.constant 0 : index
    %20 = vector.load %arg8[%c216, %c0_19] : memref<248x32xbf16, #tpu.memory_space<vmem>>, vector<1x32xbf16>
    tpu.vector_store %arg8[%c216, %c0_19], %0 {strides = array<i32>} : memref<248x32xbf16, #tpu.memory_space<vmem>>, vector<1x32xbf16>,
    %c233 = arith.constant 233 : index
    %c0_20 = arith.constant 0 : index
    %21 = vector.load %arg8[%c233, %c0_20] : memref<248x32xbf16, #tpu.memory_space<vmem>>, vector<7x32xbf16>
    tpu.vector_store %arg8[%c233, %c0_20], %1 {strides = array<i32>} : memref<248x32xbf16, #tpu.memory_space<vmem>>, vector<7x32xbf16>,
    %cst_21 = arith.constant 0.000000e+00 : bf16
    %22 = vector.broadcast %cst_21 : bf16 to vector<8x32xbf16>
    %c240 = arith.constant 240 : index
    %c0_22 = arith.constant 0 : index
    %23 = vector.load %arg8[%c240, %c0_22] : memref<248x32xbf16, #tpu.memory_space<vmem>>, vector<8x32xbf16>
    tpu.vector_store %arg8[%c240, %c0_22], %22 {strides = array<i32>} : memref<248x32xbf16, #tpu.memory_space<vmem>>, vector<8x32xbf16>,
    %c0_23 = arith.constant 0 : index
    %c0_24 = arith.constant 0 : index
    %c0_25 = arith.constant 0 : index
    %c0_26 = arith.constant 0 : index
    %24 = vector.load %arg2[%c0_23, %c0_24, %c0_25, %c0_26] : memref<1x8x16x32xf32, #tpu.memory_space<vmem>>, vector<1x8x16x32xf32>
    %25 = vector.shape_cast %24 : vector<1x8x16x32xf32> to vector<8x16x32xf32>
    %cst_27 = arith.constant 0.000000e+00 : f32
    %26 = vector.broadcast %cst_27 : f32 to vector<8x16x32xf32>
    %27 = arith.maximumf %25, %26 : vector<8x16x32xf32>
    %c0_28 = arith.constant 0 : index
    %c0_29 = arith.constant 0 : index
    %c0_30 = arith.constant 0 : index
    %c0_31 = arith.constant 0 : index
    %28 = vector.load %arg3[%c0_28, %c0_29, %c0_30, %c0_31] : memref<1x1x16x32xf32, #tpu.memory_space<vmem>>, vector<1x1x16x32xf32>
    %29 = vector.shape_cast %28 : vector<1x1x16x32xf32> to vector<16x32xf32>
    %cst_32 = arith.constant 0.000000e+00 : f32
    %30 = vector.broadcast %cst_32 : f32 to vector<16x32xf32>
    %31 = arith.maximumf %29, %30 : vector<16x32xf32>
    %c0_i32 = arith.constant 0 : i32
    %32 = arith.cmpi sgt, %arg1, %c0_i32 : i32
    %33 = arith.extui %32 : i1 to i32
    %34 = arith.sitofp %33 : i32 to f32
    %35 = vector.broadcast %34 : f32 to vector<16x32xf32>
    %36 = arith.mulf %31, %35 : vector<16x32xf32>
    %c0_33 = arith.constant 0 : index
    %c0_34 = arith.constant 0 : index
    %c0_35 = arith.constant 0 : index
    %c0_36 = arith.constant 0 : index
    %37 = vector.load %arg4[%c0_33, %c0_34, %c0_35, %c0_36] : memref<1x1x16x32xf32, #tpu.memory_space<vmem>>, vector<1x1x16x32xf32>
    %38 = vector.shape_cast %37 : vector<1x1x16x32xf32> to vector<16x32xf32>
    %cst_37 = arith.constant 0.000000e+00 : f32
    %39 = vector.broadcast %cst_37 : f32 to vector<16x32xf32>
    %40 = arith.maximumf %38, %39 : vector<16x32xf32>
    %c1_i32 = arith.constant 1 : i32
    %41 = arith.cmpi slt, %arg1, %c1_i32 : i32
    %42 = arith.extui %41 : i1 to i32
    %43 = arith.sitofp %42 : i32 to f32
    %44 = vector.broadcast %43 : f32 to vector<16x32xf32>
    %45 = arith.mulf %40, %44 : vector<16x32xf32>
    %46 = arith.truncf %36 : vector<16x32xf32> to vector<16x32xbf16>
    %c1 = arith.constant 1 : index
    %c0_38 = arith.constant 0 : index
    %47 = vector.load %arg8[%c1, %c0_38] : memref<248x32xbf16, #tpu.memory_space<vmem>>, vector<16x32xbf16>
    tpu.vector_store %arg8[%c1, %c0_38], %46 {strides = array<i32>} : memref<248x32xbf16, #tpu.memory_space<vmem>>, vector<16x32xbf16>,
    %48 = arith.truncf %45 : vector<16x32xf32> to vector<16x32xbf16>
    %c217 = arith.constant 217 : index
    %c0_39 = arith.constant 0 : index
    %49 = vector.load %arg8[%c217, %c0_39] : memref<248x32xbf16, #tpu.memory_space<vmem>>, vector<16x32xbf16>
    tpu.vector_store %arg8[%c217, %c0_39], %48 {strides = array<i32>} : memref<248x32xbf16, #tpu.memory_space<vmem>>, vector<16x32xbf16>,
    %50 = vector.extract_strided_slice %27 {offsets = [0, 0, 0], sizes = [1, 16, 32], strides = [1, 1, 1]} : vector<8x16x32xf32> to vector<1x16x32xf32>
    %51 = vector.shape_cast %50 : vector<1x16x32xf32> to vector<16x32xf32>
    %52 = arith.truncf %51 : vector<16x32xf32> to vector<16x32xbf16>
    %c25 = arith.constant 25 : index
    %c0_40 = arith.constant 0 : index
    %53 = vector.load %arg8[%c25, %c0_40] : memref<248x32xbf16, #tpu.memory_space<vmem>>, vector<16x32xbf16>
    tpu.vector_store %arg8[%c25, %c0_40], %52 {strides = array<i32>} : memref<248x32xbf16, #tpu.memory_space<vmem>>, vector<16x32xbf16>,
    %54 = vector.extract_strided_slice %27 {offsets = [1, 0, 0], sizes = [1, 16, 32], strides = [1, 1, 1]} : vector<8x16x32xf32> to vector<1x16x32xf32>
    %55 = vector.shape_cast %54 : vector<1x16x32xf32> to vector<16x32xf32>
    %56 = arith.truncf %55 : vector<16x32xf32> to vector<16x32xbf16>
    %c49 = arith.constant 49 : index
    %c0_41 = arith.constant 0 : index
    %57 = vector.load %arg8[%c49, %c0_41] : memref<248x32xbf16, #tpu.memory_space<vmem>>, vector<16x32xbf16>
    tpu.vector_store %arg8[%c49, %c0_41], %56 {strides = array<i32>} : memref<248x32xbf16, #tpu.memory_space<vmem>>, vector<16x32xbf16>,
    %58 = vector.extract_strided_slice %27 {offsets = [2, 0, 0], sizes = [1, 16, 32], strides = [1, 1, 1]} : vector<8x16x32xf32> to vector<1x16x32xf32>
    %59 = vector.shape_cast %58 : vector<1x16x32xf32> to vector<16x32xf32>
    %60 = arith.truncf %59 : vector<16x32xf32> to vector<16x32xbf16>
    %c73 = arith.constant 73 : index
    %c0_42 = arith.constant 0 : index
    %61 = vector.load %arg8[%c73, %c0_42] : memref<248x32xbf16, #tpu.memory_space<vmem>>, vector<16x32xbf16>
    tpu.vector_store %arg8[%c73, %c0_42], %60 {strides = array<i32>} : memref<248x32xbf16, #tpu.memory_space<vmem>>, vector<16x32xbf16>,
    %62 = vector.extract_strided_slice %27 {offsets = [3, 0, 0], sizes = [1, 16, 32], strides = [1, 1, 1]} : vector<8x16x32xf32> to vector<1x16x32xf32>
    %63 = vector.shape_cast %62 : vector<1x16x32xf32> to vector<16x32xf32>
    %64 = arith.truncf %63 : vector<16x32xf32> to vector<16x32xbf16>
    %c97 = arith.constant 97 : index
    %c0_43 = arith.constant 0 : index
    %65 = vector.load %arg8[%c97, %c0_43] : memref<248x32xbf16, #tpu.memory_space<vmem>>, vector<16x32xbf16>
    tpu.vector_store %arg8[%c97, %c0_43], %64 {strides = array<i32>} : memref<248x32xbf16, #tpu.memory_space<vmem>>, vector<16x32xbf16>,
    %66 = vector.extract_strided_slice %27 {offsets = [4, 0, 0], sizes = [1, 16, 32], strides = [1, 1, 1]} : vector<8x16x32xf32> to vector<1x16x32xf32>
    %67 = vector.shape_cast %66 : vector<1x16x32xf32> to vector<16x32xf32>
    %68 = arith.truncf %67 : vector<16x32xf32> to vector<16x32xbf16>
    %c121 = arith.constant 121 : index
    %c0_44 = arith.constant 0 : index
    %69 = vector.load %arg8[%c121, %c0_44] : memref<248x32xbf16, #tpu.memory_space<vmem>>, vector<16x32xbf16>
    tpu.vector_store %arg8[%c121, %c0_44], %68 {strides = array<i32>} : memref<248x32xbf16, #tpu.memory_space<vmem>>, vector<16x32xbf16>,
    %70 = vector.extract_strided_slice %27 {offsets = [5, 0, 0], sizes = [1, 16, 32], strides = [1, 1, 1]} : vector<8x16x32xf32> to vector<1x16x32xf32>
    %71 = vector.shape_cast %70 : vector<1x16x32xf32> to vector<16x32xf32>
    %72 = arith.truncf %71 : vector<16x32xf32> to vector<16x32xbf16>
    %c145 = arith.constant 145 : index
    %c0_45 = arith.constant 0 : index
    %73 = vector.load %arg8[%c145, %c0_45] : memref<248x32xbf16, #tpu.memory_space<vmem>>, vector<16x32xbf16>
    tpu.vector_store %arg8[%c145, %c0_45], %72 {strides = array<i32>} : memref<248x32xbf16, #tpu.memory_space<vmem>>, vector<16x32xbf16>,
    %74 = vector.extract_strided_slice %27 {offsets = [6, 0, 0], sizes = [1, 16, 32], strides = [1, 1, 1]} : vector<8x16x32xf32> to vector<1x16x32xf32>
    %75 = vector.shape_cast %74 : vector<1x16x32xf32> to vector<16x32xf32>
    %76 = arith.truncf %75 : vector<16x32xf32> to vector<16x32xbf16>
    %c169 = arith.constant 169 : index
    %c0_46 = arith.constant 0 : index
    %77 = vector.load %arg8[%c169, %c0_46] : memref<248x32xbf16, #tpu.memory_space<vmem>>, vector<16x32xbf16>
    tpu.vector_store %arg8[%c169, %c0_46], %76 {strides = array<i32>} : memref<248x32xbf16, #tpu.memory_space<vmem>>, vector<16x32xbf16>,
    %78 = vector.extract_strided_slice %27 {offsets = [7, 0, 0], sizes = [1, 16, 32], strides = [1, 1, 1]} : vector<8x16x32xf32> to vector<1x16x32xf32>
    %79 = vector.shape_cast %78 : vector<1x16x32xf32> to vector<16x32xf32>
    %80 = arith.truncf %79 : vector<16x32xf32> to vector<16x32xbf16>
    %c193 = arith.constant 193 : index
    %c0_47 = arith.constant 0 : index
    %81 = vector.load %arg8[%c193, %c0_47] : memref<248x32xbf16, #tpu.memory_space<vmem>>, vector<16x32xbf16>
    tpu.vector_store %arg8[%c193, %c0_47], %80 {strides = array<i32>} : memref<248x32xbf16, #tpu.memory_space<vmem>>, vector<16x32xbf16>,
    %cst_48 = arith.constant 0.000000e+00 : f32
    %82 = vector.broadcast %cst_48 : f32 to vector<192x16xf32>
    %c0_49 = arith.constant 0 : index
    %c0_50 = arith.constant 0 : index
    %83 = vector.load %arg8[%c0_49, %c0_50] : memref<248x32xbf16, #tpu.memory_space<vmem>>, vector<192x32xbf16>
    %c0_51 = arith.constant 0 : index
    %c0_52 = arith.constant 0 : index
    %c0_53 = arith.constant 0 : index
    %84 = vector.load %arg5[%c0_51, %c0_52, %c0_53] : memref<9x32x16xbf16, #tpu.memory_space<vmem>>, vector<1x32x16xbf16>
    %85 = vector.shape_cast %84 : vector<1x32x16xbf16> to vector<32x16xbf16>
    %cst_54 = arith.constant dense<0.000000e+00> : vector<192x16xf32>
    %86 = tpu.matmul %83, %85, %cst_54 {dimension_numbers = #tpu.dot_dimension_numbers<[1], [0], [0], [1], [0, 0, 1, 1], [], []>} : vector<192x32xbf16>, vector<32x16xbf16>, vector<192x16xf32> -> vector<192x16xf32>
    %87 = arith.addf %82, %86 : vector<192x16xf32>
    %c1_55 = arith.constant 1 : index
    %c0_56 = arith.constant 0 : index
    %88 = vector.load %arg8[%c1_55, %c0_56] : memref<248x32xbf16, #tpu.memory_space<vmem>>, vector<192x32xbf16>
    %c1_57 = arith.constant 1 : index
    %c0_58 = arith.constant 0 : index
    %c0_59 = arith.constant 0 : index
    %89 = vector.load %arg5[%c1_57, %c0_58, %c0_59] : memref<9x32x16xbf16, #tpu.memory_space<vmem>>, vector<1x32x16xbf16>
    %90 = vector.shape_cast %89 : vector<1x32x16xbf16> to vector<32x16xbf16>
    %cst_60 = arith.constant dense<0.000000e+00> : vector<192x16xf32>
    %91 = tpu.matmul %88, %90, %cst_60 {dimension_numbers = #tpu.dot_dimension_numbers<[1], [0], [0], [1], [0, 0, 1, 1], [], []>} : vector<192x32xbf16>, vector<32x16xbf16>, vector<192x16xf32> -> vector<192x16xf32>
    %92 = arith.addf %87, %91 : vector<192x16xf32>
    %c2 = arith.constant 2 : index
    %c0_61 = arith.constant 0 : index
    %93 = vector.load %arg8[%c2, %c0_61] : memref<248x32xbf16, #tpu.memory_space<vmem>>, vector<192x32xbf16>
    %c2_62 = arith.constant 2 : index
    %c0_63 = arith.constant 0 : index
    %c0_64 = arith.constant 0 : index
    %94 = vector.load %arg5[%c2_62, %c0_63, %c0_64] : memref<9x32x16xbf16, #tpu.memory_space<vmem>>, vector<1x32x16xbf16>
    %95 = vector.shape_cast %94 : vector<1x32x16xbf16> to vector<32x16xbf16>
    %cst_65 = arith.constant dense<0.000000e+00> : vector<192x16xf32>
    %96 = tpu.matmul %93, %95, %cst_65 {dimension_numbers = #tpu.dot_dimension_numbers<[1], [0], [0], [1], [0, 0, 1, 1], [], []>} : vector<192x32xbf16>, vector<32x16xbf16>, vector<192x16xf32> -> vector<192x16xf32>
    %97 = arith.addf %92, %96 : vector<192x16xf32>
    %c24_66 = arith.constant 24 : index
    %c0_67 = arith.constant 0 : index
    %98 = vector.load %arg8[%c24_66, %c0_67] : memref<248x32xbf16, #tpu.memory_space<vmem>>, vector<192x32xbf16>
    %c3 = arith.constant 3 : index
    %c0_68 = arith.constant 0 : index
    %c0_69 = arith.constant 0 : index
    %99 = vector.load %arg5[%c3, %c0_68, %c0_69] : memref<9x32x16xbf16, #tpu.memory_space<vmem>>, vector<1x32x16xbf16>
    %100 = vector.shape_cast %99 : vector<1x32x16xbf16> to vector<32x16xbf16>
    %cst_70 = arith.constant dense<0.000000e+00> : vector<192x16xf32>
    %101 = tpu.matmul %98, %100, %cst_70 {dimension_numbers = #tpu.dot_dimension_numbers<[1], [0], [0], [1], [0, 0, 1, 1], [], []>} : vector<192x32xbf16>, vector<32x16xbf16>, vector<192x16xf32> -> vector<192x16xf32>
    %102 = arith.addf %97, %101 : vector<192x16xf32>
    %c25_71 = arith.constant 25 : index
    %c0_72 = arith.constant 0 : index
    %103 = vector.load %arg8[%c25_71, %c0_72] : memref<248x32xbf16, #tpu.memory_space<vmem>>, vector<192x32xbf16>
    %c4 = arith.constant 4 : index
    %c0_73 = arith.constant 0 : index
    %c0_74 = arith.constant 0 : index
    %104 = vector.load %arg5[%c4, %c0_73, %c0_74] : memref<9x32x16xbf16, #tpu.memory_space<vmem>>, vector<1x32x16xbf16>
    %105 = vector.shape_cast %104 : vector<1x32x16xbf16> to vector<32x16xbf16>
    %cst_75 = arith.constant dense<0.000000e+00> : vector<192x16xf32>
    %106 = tpu.matmul %103, %105, %cst_75 {dimension_numbers = #tpu.dot_dimension_numbers<[1], [0], [0], [1], [0, 0, 1, 1], [], []>} : vector<192x32xbf16>, vector<32x16xbf16>, vector<192x16xf32> -> vector<192x16xf32>
    %107 = arith.addf %102, %106 : vector<192x16xf32>
    %c26 = arith.constant 26 : index
    %c0_76 = arith.constant 0 : index
    %108 = vector.load %arg8[%c26, %c0_76] : memref<248x32xbf16, #tpu.memory_space<vmem>>, vector<192x32xbf16>
    %c5 = arith.constant 5 : index
    %c0_77 = arith.constant 0 : index
    %c0_78 = arith.constant 0 : index
    %109 = vector.load %arg5[%c5, %c0_77, %c0_78] : memref<9x32x16xbf16, #tpu.memory_space<vmem>>, vector<1x32x16xbf16>
    %110 = vector.shape_cast %109 : vector<1x32x16xbf16> to vector<32x16xbf16>
    %cst_79 = arith.constant dense<0.000000e+00> : vector<192x16xf32>
    %111 = tpu.matmul %108, %110, %cst_79 {dimension_numbers = #tpu.dot_dimension_numbers<[1], [0], [0], [1], [0, 0, 1, 1], [], []>} : vector<192x32xbf16>, vector<32x16xbf16>, vector<192x16xf32> -> vector<192x16xf32>
    %112 = arith.addf %107, %111 : vector<192x16xf32>
    %c48_80 = arith.constant 48 : index
    %c0_81 = arith.constant 0 : index
    %113 = vector.load %arg8[%c48_80, %c0_81] : memref<248x32xbf16, #tpu.memory_space<vmem>>, vector<192x32xbf16>
    %c6 = arith.constant 6 : index
    %c0_82 = arith.constant 0 : index
    %c0_83 = arith.constant 0 : index
    %114 = vector.load %arg5[%c6, %c0_82, %c0_83] : memref<9x32x16xbf16, #tpu.memory_space<vmem>>, vector<1x32x16xbf16>
    %115 = vector.shape_cast %114 : vector<1x32x16xbf16> to vector<32x16xbf16>
    %cst_84 = arith.constant dense<0.000000e+00> : vector<192x16xf32>
    %116 = tpu.matmul %113, %115, %cst_84 {dimension_numbers = #tpu.dot_dimension_numbers<[1], [0], [0], [1], [0, 0, 1, 1], [], []>} : vector<192x32xbf16>, vector<32x16xbf16>, vector<192x16xf32> -> vector<192x16xf32>
    %117 = arith.addf %112, %116 : vector<192x16xf32>
    %c49_85 = arith.constant 49 : index
    %c0_86 = arith.constant 0 : index
    %118 = vector.load %arg8[%c49_85, %c0_86] : memref<248x32xbf16, #tpu.memory_space<vmem>>, vector<192x32xbf16>
    %c7 = arith.constant 7 : index
    %c0_87 = arith.constant 0 : index
    %c0_88 = arith.constant 0 : index
    %119 = vector.load %arg5[%c7, %c0_87, %c0_88] : memref<9x32x16xbf16, #tpu.memory_space<vmem>>, vector<1x32x16xbf16>
    %120 = vector.shape_cast %119 : vector<1x32x16xbf16> to vector<32x16xbf16>
    %cst_89 = arith.constant dense<0.000000e+00> : vector<192x16xf32>
    %121 = tpu.matmul %118, %120, %cst_89 {dimension_numbers = #tpu.dot_dimension_numbers<[1], [0], [0], [1], [0, 0, 1, 1], [], []>} : vector<192x32xbf16>, vector<32x16xbf16>, vector<192x16xf32> -> vector<192x16xf32>
    %122 = arith.addf %117, %121 : vector<192x16xf32>
    %c50 = arith.constant 50 : index
    %c0_90 = arith.constant 0 : index
    %123 = vector.load %arg8[%c50, %c0_90] : memref<248x32xbf16, #tpu.memory_space<vmem>>, vector<192x32xbf16>
    %c8 = arith.constant 8 : index
    %c0_91 = arith.constant 0 : index
    %c0_92 = arith.constant 0 : index
    %124 = vector.load %arg5[%c8, %c0_91, %c0_92] : memref<9x32x16xbf16, #tpu.memory_space<vmem>>, vector<1x32x16xbf16>
    %125 = vector.shape_cast %124 : vector<1x32x16xbf16> to vector<32x16xbf16>
    %cst_93 = arith.constant dense<0.000000e+00> : vector<192x16xf32>
    %126 = tpu.matmul %123, %125, %cst_93 {dimension_numbers = #tpu.dot_dimension_numbers<[1], [0], [0], [1], [0, 0, 1, 1], [], []>} : vector<192x32xbf16>, vector<32x16xbf16>, vector<192x16xf32> -> vector<192x16xf32>
    %127 = arith.addf %122, %126 : vector<192x16xf32>
    %cst_94 = arith.constant 0.000000e+00 : f32
    %128 = vector.broadcast %cst_94 : f32 to vector<192x16xf32>
    %129 = arith.maximumf %127, %128 : vector<192x16xf32>
    %130 = arith.truncf %129 : vector<192x16xf32> to vector<192x16xbf16>
    %c0_95 = arith.constant 0 : index
    %c0_96 = arith.constant 0 : index
    %131 = vector.load %arg6[%c0_95, %c0_96] : memref<16x32xbf16, #tpu.memory_space<vmem>>, vector<16x32xbf16>
    %cst_97 = arith.constant dense<0.000000e+00> : vector<192x32xf32>
    %132 = tpu.matmul %130, %131, %cst_97 {dimension_numbers = #tpu.dot_dimension_numbers<[1], [0], [0], [1], [0, 0, 1, 1], [], []>} : vector<192x16xbf16>, vector<16x32xbf16>, vector<192x32xf32> -> vector<192x32xf32>
    %133 = vector.shape_cast %132 : vector<192x32xf32> to vector<8x24x32xf32>
    %134 = vector.extract_strided_slice %133 {offsets = [0, 0, 0], sizes = [8, 16, 32], strides = [1, 1, 1]} : vector<8x24x32xf32> to vector<8x16x32xf32>
    %135 = arith.addf %25, %134 : vector<8x16x32xf32>
    %c0_98 = arith.constant 0 : index
    %c0_99 = arith.constant 0 : index
    %c0_100 = arith.constant 0 : index
    %c0_101 = arith.constant 0 : index
    %136 = vector.load %arg7[%c0_98, %c0_99, %c0_100, %c0_101] : memref<1x8x16x32xf32, #tpu.memory_space<vmem>>, vector<1x8x16x32xf32>
    %137 = vector.shape_cast %136 : vector<1x8x16x32xf32> to vector<8x16x32xf32>
    %138 = vector.shape_cast %135 : vector<8x16x32xf32> to vector<1x8x16x32xf32>
    tpu.vector_store %arg7[%c0_98, %c0_99, %c0_100, %c0_101], %138 {strides = array<i32>} : memref<1x8x16x32xf32, #tpu.memory_space<vmem>>, vector<1x8x16x32xf32>,
    return
  }
  func.func @transform_0(%arg0: i32, %arg1: i32) -> (i32, i32, i32, i32) {
    %c0_i32 = arith.constant 0 : i32
    %c0_i32_0 = arith.constant 0 : i32
    %c0_i32_1 = arith.constant 0 : i32
    return %arg0, %arg1, %c0_i32, %c0_i32_0 : i32, i32, i32, i32
  }
  func.func @transform_1(%arg0: i32, %arg1: i32) -> (i32, i32, i32, i32) {
    %c8_i32 = arith.constant 8 : i32
    %0 = arith.muli %arg1, %c8_i32 : i32
    %c1_i32 = arith.constant 1 : i32
    %1 = arith.subi %0, %c1_i32 : i32
    %c0_i32 = arith.constant 0 : i32
    %2 = arith.maxsi %1, %c0_i32 : i32
    %c0_i32_0 = arith.constant 0 : i32
    %c0_i32_1 = arith.constant 0 : i32
    %c0_i32_2 = arith.constant 0 : i32
    return %arg0, %2, %c0_i32_0, %c0_i32_1 : i32, i32, i32, i32
  }
  func.func @transform_2(%arg0: i32, %arg1: i32) -> (i32, i32, i32, i32) {
    %c1_i32 = arith.constant 1 : i32
    %0 = arith.addi %arg1, %c1_i32 : i32
    %c8_i32 = arith.constant 8 : i32
    %1 = arith.muli %0, %c8_i32 : i32
    %c15_i32 = arith.constant 15 : i32
    %2 = arith.minsi %1, %c15_i32 : i32
    %c0_i32 = arith.constant 0 : i32
    %c0_i32_0 = arith.constant 0 : i32
    %c0_i32_1 = arith.constant 0 : i32
    return %arg0, %2, %c0_i32, %c0_i32_0 : i32, i32, i32, i32
  }
  func.func @transform_3(%arg0: i32, %arg1: i32) -> (i32, i32, i32) {
    %c0_i32 = arith.constant 0 : i32
    %c0_i32_0 = arith.constant 0 : i32
    %c0_i32_1 = arith.constant 0 : i32
    %c0_i32_2 = arith.constant 0 : i32
    return %c0_i32, %c0_i32_0, %c0_i32_1 : i32, i32, i32
  }
  func.func @transform_4(%arg0: i32, %arg1: i32) -> (i32, i32) {
    %c0_i32 = arith.constant 0 : i32
    %c0_i32_0 = arith.constant 0 : i32
    %c0_i32_1 = arith.constant 0 : i32
    return %c0_i32, %c0_i32_0 : i32, i32
  }
  func.func @transform_5(%arg0: i32, %arg1: i32) -> (i32, i32, i32, i32) {
    %c0_i32 = arith.constant 0 : i32
    %c0_i32_0 = arith.constant 0 : i32
    %c0_i32_1 = arith.constant 0 : i32
    return %arg0, %arg1, %c0_i32, %c0_i32_0 : i32, i32, i32, i32
  }
}

</mosaic_0001>

<bundles_post_ra>
// kernel: residual_block_forward.1
= control target key start
LH: loop header
LB: loop body
LE: loop exit
PB: predicated region body
PF: predicated region fallthrough
CT: control target
= control target key end

     0   :  { %s5429_s0 = inlined_call_operand.hbm [shape: f32[2,16,16,32], index: 0, kind: input, shape index: {}, may-alias: {0,1,2}]   ;;  %s5430_s1 = inlined_call_operand.hbm [shape: f32[2,16,16,32], index: 1, kind: input, shape index: {}, may-alias: {0,1,2}]   ;;  %s5431_s2 = inlined_call_operand.hbm [shape: f32[2,16,16,32], index: 2, kind: input, shape index: {}, may-alias: {0,1,2}]   ;;  %s5432_s3 = inlined_call_operand.vmem [shape: bf16[9,32,16], index: 3, kind: input, shape index: {}]   ;;  %s5433_s4 = inlined_call_operand.vmem [shape: bf16[16,32], index: 4, kind: input, shape index: {}]   ;;  %s5434_s5 = inlined_call_operand.hbm [shape: f32[2,16,16,32], index: 5, kind: output, shape index: {}]  }
   0x1   :  { %5453 = sst [smem:[#allocation27_spill]] %s5429_s0 }
   0x2   :  { %5454 = sst [smem:[#allocation28_spill]] %s5430_s1 }
   0x3   :  { %5455 = sst [smem:[#allocation29_spill]] %s5432_s3 }
   0x4   :  { %5456 = sst [smem:[#allocation30_spill]] %s5433_s4 }
   0x5   :  { %5457 = sst [smem:[#allocation31_spill]] %s5434_s5 }
   0x6   :  { %10 = vsyncpa [#allocation4], 0 }
   0x7   :  { %12 = vsyncpa [#allocation4 + $0x1], 0 }
   0x8   :  { %13 = vsyncpa [#allocation7], 0 }
   0x9   :  { %15 = vsyncpa [#allocation7 + $0x1], 0 }
   0xa   :  { %16 = vsyncpa [#allocation5], 0 }
   0xb   :  { %18 = vsyncpa [#allocation5 + $0x1], 0  ;;  %s4245_s18 = smov 0   ;;  %s4247_s19 = smov 0  }
   0xc   :  { %s4249_s20 = smov 0   ;;  %s4251_s21 = smov 0  }
   0xd   :  { %s4253_s22 = smov 0   ;;  %s4255_s23 = smov 0  }
   0xe   :  { %s4257_s24 = smov 0   ;;  %s4259_s25 = smov 0  }
   0xf   :  { %s4261_s26 = smov 0   ;;  %s4263_s27 = smov 0  }
  0x10   :  { %s4265_s28 = smov 0   ;;  %s4267_s29 = smov 0  }
  0x11   :  { %s4269_s30 = smov 0   ;;  %s4271_s6 = smov 0  }
  0x12 LB: > { %5458 = sst [smem:[#allocation14_spill]] %s4176_s23  ;;  %s4316_s7 = sadd.s32 4294967295, %s4208_s6   ;;  %s4208_s6 = sphi %s4271_s6, %s24_s6   ;;  %s4204_s30 = sphi %s4269_s30, %s5518_s30   ;;  %s4200_s29 = sphi %s4267_s29, %s5508_s29   ;;  %s4196_s28 = sphi %s4265_s28, %s5507_s28   ;;  %s4192_s27 = sphi %s4263_s27, %s5506_s27   ;;  %s4188_s26 = sphi %s4261_s26, %s5505_s26   ;;  %s4184_s25 = sphi %s4259_s25, %s5517_s25   ;;  %s4180_s24 = sphi %s4257_s24, %s5516_s24   ;;  %s4176_s23 = sphi %s4255_s23, %s5503_s23   ;;  %s4172_s22 = sphi %s4253_s22, %s5515_s22   ;;  %s4168_s21 = sphi %s4251_s21, %s5514_s21   ;;  %s4164_s20 = sphi %s4249_s20, %s5513_s20   ;;  %s4160_s19 = sphi %s4247_s19, %s5512_s19   ;;  %s4156_s18 = sphi %s4245_s18, %s5511_s18  }
  0x13   : > { %5459 = sst [smem:[#allocation15_spill]] %s4180_s24  ;;  %s33_s8 = sadd.s32 1, %s4200_s29 }
  0x14   : > { %5460 = sst [smem:[#allocation16_spill]] %s4188_s26  ;;  %p34_p0 = scmp.ge.s32.totalorder %s33_s8, 2 }
  0x15   : > { %5461 = sst [smem:[#allocation17_spill]] %s4192_s27  ;;  %s36_s9 = sadd.s32 1, %s4204_s30 }
  0x16   : > { %5462 = sst [smem:[#allocation18_spill]] %s4196_s28  ;;  %p53_p1 = scmp.eq.s32.totalorder %s4208_s6, 0 }
  0x17   : > { %5463 = sst [smem:[#allocation19_spill]] %s4200_s29  ;;  %p59_p2 = scmp.eq.s32.totalorder %s4316_s7, 0 }
  0x18   : > { %5464 = sst [smem:[#allocation20_spill]] %s4204_s30  ;;  %s5520_s8 = smov (%p34_p0, %s33_s8), 0 }
  0x19   : > { %5465 = sst [smem:[#allocation21_spill]] %s5520_s8  ;;  %s5522_s9 = smov (!%p34_p0, %s36_s9), %s4204_s30 }
  0x1a   : > { %s41_s10 = ssub.s32 %s4200_s29, %s5520_s8  ;;  %s3209_s11 = sshll.u32 %s4200_s29, 3 }
  0x1b   : > { %p38_p3 = scmp.ge.s32.totalorder %s5522_s9, 2  ;;  %s3210_s12 = sadd.s32 4294967295, %s3209_s11 }
  0x1c   : > { %p70_p4 = scmp.gt.s32.totalorder %s3210_s12, 0  ;;  %s3211_s13 = sshll.u32 %s5520_s8, 3 }
  0x1d   : > { %s5524_s9 = smov (%p38_p3, %s5522_s9), 0  ;;  %s3212_s15 = sadd.s32 4294967295, %s3211_s13 }
  0x1e   : > { %5466 = sst [smem:[#allocation22_spill]] %s5524_s9  ;;  %s5526_s12 = smov (!%p70_p4, %s3210_s12), 0 }
  0x1f   : > { %s4333_s14 = ssub.s32 %s4204_s30, %s5524_s9  ;;  %p74_p5 = scmp.gt.s32.totalorder %s3212_s15, 0 }
  0x20   : > { %s4336_s16 = sor.u32 %s41_s10, %s4333_s14  ;;  %s81_s17 = sadd.s32 1, %s4176_s23 }
  0x21   : > { %p43_p6 = scmp.eq.s32.totalorder %s4336_s16, 0  ;;  %s5528_s15 = smov (!%p74_p5, %s3212_s15), 0 }
  0x22   : > { %p88_p7 = scmp.ne.s32.totalorder %s4176_s23, %s4172_s22  ;;  %p94_p8 = scmp.ne.s32.totalorder %s4172_s22, %s4168_s21 }
  0x23   : > { %s77_s8 = ssub.s32 %s5526_s12, %s5528_s15  ;;  %s4344_s9 = sadd.s32 8, %s3209_s11 }
  0x24   : > { %s78_s5 = sor.u32 %s77_s8, %s4333_s14  ;;  %p4349_p9 = por %p88_p7, %p53_p1 }
  0x25   : > { %p79_p10 = scmp.eq.s32.totalorder %s78_s5, 0  ;;  %p4355_p11 = por %p94_p8, %p59_p2 }
  0x26   : > { %s4360_s21 = sadd.s32 8, %s3211_s13  ;;  %p5451_p0 = scmp.lt.s32.totalorder %s4208_s6, 4 }
  0x27   : > { %s5468_s28 = scalar_select %p4355_p11, 1, 0 }
  0x28   : > { %s4363_s11 = scalar_select %p79_p10, %s4176_s23, %s81_s17  }
  0x29   : > { %5469 = sst [smem:[#allocation23_spill]] %s5468_s28  ;;  %s4368_s8 = sshll.u32 %s4204_s30, 5 }
  0x2a   : > { %5470 = sst [smem:[#allocation24_spill]] %s4363_s11  ;;  %s255_s5 = sand.u32 1, %s4208_s6  }
  0x2b   : > { %s257_s15 = sand.u32 1, %s4176_s23   ;;  %s3225_s3 = sshll.u32 %s5526_s12, 1 }
  0x2c   : > { %s3222_s4 = sshll.u32 %s257_s15, 4  ;;  %s268_s27 = sadd.s32 %s3225_s3, %s4368_s8 }
  0x2d   : > { %s259_s28 = scalar_lea.vmem [#allocation6], %s3222_s4  ;;  %s3227_s17 = sshll.u32 %s268_s27, 3 }
  0x2e   : > { %s273_s13 = sshll.u32 %s259_s28, 4  ;;  %s5471_s1 = sld [smem:[#allocation28_spill]]  ;;  %s274_s13 = int_to_ptr.vmem [resolvable:$true] %s273_s13 }
  0x2f   : > { %p3816_p3 = pnand %p5451_p0, %p4349_p9  ;;  %p3233_p4 = scmp.ge.s32.totalorder %s4208_s6, 1 }
  0x30   : > { %s4381_s4 = scalar_lea.sflag [#allocation7], %s255_s5  ;;  %s5444_s27 = smov 128  }
  0x31   : > { %s5446_s28 = smov 8   ;;  %p309_p5 = scmp.lt.s32.totalorder %s4208_s6, 5 }
  0x32   : > { %s45_s12 = sadd.s32 1, %s4188_s26  ;;  %p52_p8 = scmp.ne.s32.totalorder %s4188_s26, %s4184_s25 }
  0x33   : > { %p4388_p7 = pnand %p3233_p4, %p309_p5  ;;  %p58_p9 = scmp.ne.s32.totalorder %s4184_s25, %s4180_s24 }
  0x34   : > { %s270_s23 = scalar_lea.hbm %s5471_s1, %s3227_s17  ;;  %p198_p10 = scmp.eq.s32.totalorder %s4316_s7, 3 }
  0x35   : > { %s271_s3 = sshll.u32 %s270_s23, 4  ;;  %s3208_s23 = sadd.s32 4294967294, %s4208_s6   ;;  %s272_s3 = int_to_ptr.hbm [resolvable:$true] %s271_s3 }
  0x36   : > { %3818 = dma.hbm_to_vmem [thread:$0]  (!%p3816_p3), %s272_s3, 256, %s274_s13, %s4381_s4, %s5444_s27, %s5444_s27, %s5446_s28  }
  0x37   : > { %s4397_s10 = scalar_select %p43_p6, %s4188_s26, %s45_s12  }
  0x38   : > { %p204_p13 = scmp.eq.s32.totalorder %s3208_s23, 3  ;;  %p4406_p12 = por %p53_p1, %p52_p8 }
  0x39   : > { %5473 = sst [smem:[#allocation25_spill]] %s4397_s10  ;;  %p4412_p3 = por %p59_p2, %p58_p9 }
  0x3a   : > { %p4416_p4 = por %p198_p10, %p52_p8  ;;  %p4420_p6 = por %p204_p13, %p58_p9 }
  0x3b   : > { %s230_s13 = sand.u32 1, %s4188_s26   ;;  %s3705_s17 = sshll.u32 %s4200_s29, 4 }
  0x3c   : > { %s5477_s15 = scalar_select %p4420_p6, 1, 0 }
  0x3d   : > { %s3217_s3 = sshll.u32 %s230_s13, 7  ;;  %s240_s23 = sadd.s32 %s3705_s17, %s4368_s8 }
  0x3e   : > { %5478 = sst [smem:[#allocation26_spill]] %s5477_s15  ;;  %s3221_s12 = sshll.u32 %s240_s23, 3 }
  0x3f   : > { %s234_s27 = scalar_lea.vmem [#allocation3], %s3217_s3  ;;  %s5479_s0 = sld [smem:[#allocation27_spill]] }
  0x40   : > { %s245_s28 = sshll.u32 %s234_s27, 4  ;;  %p3813_p13 = pnand %p5451_p0, %p4406_p12  ;;  %s246_s28 = int_to_ptr.vmem [resolvable:$true] %s245_s28 }
  0x41   : > { %s231_s17 = scalar_lea.sflag [#allocation4], %s230_s13  ;;  %s5480_s29 = smov 8  }
  0x42   : > { %s5481_s23 = smov 128   ;;  %p5482_p5 = scmp.lt.s32.totalorder %s4344_s9, 15 }
  0x43   : > { %p5483_p8 = scmp.lt.s32.totalorder %s4360_s21, 15  ;;  %s117_s1 = sadd.s32 1, %s4164_s20 }
  0x44   : > { %s5530_s9 = smov (!%p5482_p5, %s4344_s9), 15  ;;  %p124_p9 = scmp.ne.s32.totalorder %s4164_s20, %s4160_s19 }
  0x45   : > { %s242_s15 = scalar_lea.hbm %s5479_s0, %s3221_s12  ;;  %s5532_s21 = smov (!%p5483_p8, %s4360_s21), 15 }
  0x46   : > { %s243_s26 = sshll.u32 %s242_s15, 4  ;;  %s113_s27 = ssub.s32 %s5530_s9, %s5532_s21  ;;  %s244_s26 = int_to_ptr.hbm [resolvable:$true] %s243_s26 }
  0x47   : > { %3815 = dma.hbm_to_vmem [thread:$0]  (!%p3813_p13), %s244_s26, 2048, %s246_s28, %s231_s17, %s5481_s23, %s5481_s23, %s5480_s29  }
  0x48   : > { %p130_p10 = scmp.ne.s32.totalorder %s4160_s19, %s4156_s18  ;;  %s114_s10 = sor.u32 %s113_s27, %s4333_s14 }
  0x49   : > { %p4451_p12 = por %p124_p9, %p53_p1  ;;  %p115_p0 = scmp.eq.s32.totalorder %s114_s10, 0 }
  0x4a   : > { %p4457_p13 = por %p130_p10, %p59_p2  ;;  %s285_s28 = sand.u32 1, %s4164_s20  }
  0x4b   : > { %s3230_s15 = sshll.u32 %s5530_s9, 1  ;;  %s3228_s18 = sshll.u32 %s285_s28, 4 }
  0x4c   : > { %s4463_s13 = scalar_select %p115_p0, %s4164_s20, %s117_s1  }
  0x4d   : > { %s296_s14 = sadd.s32 %s3230_s15, %s4368_s8  ;;  %s287_s27 = scalar_lea.vmem [#allocation8], %s3228_s18 }
  0x4e   : > { %s3232_s21 = sshll.u32 %s296_s14, 3  ;;  %s301_s0 = sshll.u32 %s287_s27, 4  ;;  %s302_s0 = int_to_ptr.vmem [resolvable:$true] %s301_s0 }
  0x4f   : > { %s298_s17 = scalar_lea.hbm %s5431_s2, %s3232_s21  ;;  %p5486_p1 = scmp.lt.s32.totalorder %s4208_s6, 4 }
  0x50   : > { %s299_s24 = sshll.u32 %s298_s17, 4  ;;  %313 = sbr.rel (%p4388_p7) target bundleno = 874 (0x36a), region = 40  ;;  %s300_s24 = int_to_ptr.hbm [resolvable:$true] %s299_s24 }
  0x51   : > { %p3819_p2 = pnand %p5486_p1, %p4451_p12  ;;  %s4480_s9 = sand.u32 (!%p4388_p7), 1, %s4184_s25  }
  0x52   : > { %s3234_s8 = sshll.u32 (!%p4388_p7), %s4480_s9, 7  ;;  %s316_s1 = scalar_lea.sflag (!%p4388_p7), [#allocation4], %s4480_s9 }
  0x53   : > { %3821 = dma.hbm_to_vmem [thread:$0]  (!%p3819_p2), %s300_s24, 256, %s302_s0, %s4381_s4, %s5481_s23, %s5481_s23, %s5480_s29  }
  0x54   : > { %s4486_s10 = scalar_lea.vmem (!%p4388_p7), [#allocation3], %s3234_s8 }
  0x55   : > { %4139 = dma.done.wait (%p4412_p3), %s316_s1, 2048  }
  0x56   : > { %4141 = vsyncadd (%p4412_p3), %s316_s1, 4294965248  ;;  %s325_s24 = sand.u32 1, %s4316_s7   ;;  %s327_s29 = sand.u32 1, %s4172_s22  }
  0x57   : > { %s4494_s4 = sshll.u32 %s327_s29, 4  ;;  %s326_s30 = scalar_lea.sflag [#allocation7], %s325_s24 }
  0x58   : > { %s329_s23 = scalar_lea.vmem [#allocation6], %s4494_s4 }
  0x59   : > { %4143 = dma.done.wait (%p4355_p11), %s326_s30, 256  }
  0x5a   : > { %4145 = vsyncadd (%p4355_p11), %s326_s30, 4294967040  ;;  %s337_s11 = sand.u32 1, %s4160_s19  }
  0x5b   : > { %s4502_s5 = sshll.u32 %s337_s11, 4 }
  0x5c   : > { %s339_s28 = scalar_lea.vmem [#allocation8], %s4502_s5 }
  0x5d   : > { %4147 = dma.done.wait (%p4457_p13), %s326_s30, 256  }
  0x5e   : > { %4149 = vsyncadd (%p4457_p13), %s326_s30, 4294967040  ;;  %s5488_s7 = sld [smem:[#allocation17_spill]]  ;;  %vm388_vm0 = vcmask 253952   ;;  %vm389_vm1 = vsmask.f32 256  ;;  %vm394_vm2 = vcmask 257024  }
  0x5f   : > { %vm395_vm3 = vsmask.f32 7938  ;;  %vm4513_vm4 = vmand %vm388_vm0, %vm389_vm1  ;;  %s5493_s14 = sld [smem:[#allocation29_spill]]  ;;  %v418_v5 = vld [vmem:[#allocation2 + $0x30] sm:$0x1]  ;;  %v463_v7 = vld [vmem:[%s4486_s10 + $0x38] sm:$0xff] }
  0x60   : > { %vm4518_vm5 = vmand %vm394_vm2, %vm395_vm3  ;;  %v462_v6 = vld [vmem:[%s4486_s10 + $0x30] sm:$0xff]  ;;  %vm510_vm6 = vsmask.f32 4368  ;;  %v419_v8 = vsel %vm4513_vm4, 0, %v418_v5  ;;  %v479_v10 = vmax.f32 %v463_v7, 0.0  ;;  %v464_v15 = vld [vmem:[%s4486_s10 + $0x40] sm:$0xff] }
  0x61   : > { %v478_v9 = vmax.f32 %v462_v6, 0.0  ;;  %v421_v12 = vld [vmem:[#allocation2 + $0x38] sm:$0xf]  ;;  %420 = vst [vmem:[#allocation2 + $0x30] sm:$0x1] %v419_v8  ;;  %v480_v19 = vmax.f32 %v464_v15, 0.0  ;;  %vm4563_vm7 = vmor %vm389_vm1, %vm510_vm6 }
  0x62   : > { %v422_v13 = vsel %vm4518_vm5, 0, %v421_v12  ;;  %v424_v14 = vld [vmem:[#allocation2 + $0x3c] sm:$0x1]  ;;  %v656_v17 = vpack.c.bf16 %v479_v10, %v479_v10  ;;  %v391_v22 = vld [vmem:[#allocation2] sm:$0x1]  ;;  %v489_v35 = vld [vmem:[%s329_s23 + $0x8] sm:$0xff] }
  0x63   : > { %v655_v16 = vpack.c.bf16 %v478_v9, %v478_v9  ;;  %423 = vst [vmem:[#allocation2 + $0x38] sm:$0xf] %v422_v13  ;;  %v425_v18 = vsel %vm4513_vm4, 0, %v424_v14  ;;  %v456_v21 = vld [vmem:[%s4486_s10] sm:$0xff]  ;;  %v397_v23 = vld [vmem:[#allocation2 + $0x8] sm:$0xf]  ;;  %v684_v30 = vpack.c.bf16 %v480_v19, %v480_v19 }
  0x64   : > { %p492_p0 = scmp.gt.s32.totalorder %s5488_s7, 0  ;;  %426 = vst [vmem:[#allocation2 + $0x3c] sm:$0x1] %v425_v18  ;;  %v666_v27 = vshrl.u32 %v656_v17, 16  ;;  %v669_v28 = vshll.u32 %v656_v17, 16  ;;  %v392_v31 = vsel %vm4513_vm4, 0, %v391_v22 }
  0x65   : > { %v3720_v2 = vld [vmem:[%s5493_s14 + $0x8] sm:$0xff]  ;;  %v3719_v3 = vld [vmem:[%s5493_s14] sm:$0xff]  ;;  %v3722_v4 = vld [vmem:[%s5493_s14 + $0x18] sm:$0xff]  ;;  %v658_v25 = vshrl.u32 %v655_v16, 16  ;;  %v661_v26 = vshll.u32 %v655_v16, 16  ;;  %v398_v32 = vsel %vm4518_vm5, 0, %v397_v23 }
  0x66   : > { %s4510_s15 = scalar_select %p492_p0, 1, 0  ;;  %3802 = vmatpush.bf16.msra.mxu3 %v3720_v2  ;;  %3800 = vmatpush.bf16.msra.mxu2 %v3722_v4  ;;  %v3721_v11 = vld [vmem:[%s5493_s14 + $0x10] sm:$0xff]  ;;  %v3724_v20 = vld [vmem:[%s5493_s14 + $0x28] sm:$0xff]  ;;  %v3738_v36 = vld [vmem:[%s5493_s14 + $0x38] sm:$0xff]  ;;  %v668_v38 = vrot.slane %v666_v27, 7 }
  0x67   : > { %1053 = vmatpush.bf16.msra.mxu0 %v3722_v4  ;;  %1158 = vmatpush.bf16.msra.mxu1 %v3720_v2  ;;  %v400_v29 = vld [vmem:[#allocation2 + $0xc] sm:$0x1]  ;;  %v660_v37 = vrot.slane %v658_v25, 7  ;;  %393 = vst [vmem:[#allocation2] sm:$0x1] %v392_v31  ;;  %v472_v39 = vmax.f32 %v456_v21, 0.0 }
  0x68   : > { %s494_s27 = scvt.s32.f32 %s4510_s15  ;;  %v401_v33 = vsel %vm4513_vm4, 0, %v400_v29  ;;  %v488_v34 = vld [vmem:[%s329_s23] sm:$0xff]  ;;  %v687_v42 = vshrl.u32 %v684_v30, 16  ;;  %v690_v43 = vshll.u32 %v684_v30, 16  ;;  %399 = vst [vmem:[#allocation2 + $0x8] sm:$0xf] %v398_v32  ;;  %v671_v48 = vor.u32 %v669_v28, %v668_v38 }
  0x69   : > { %v490_v40 = vmax.f32 %v488_v34, 0.0  ;;  %v491_v44 = vmax.f32 %v489_v35, 0.0  ;;  %v3751_v45 = vld [vmem:[%s5493_s14 + $0x48] sm:$0xff]  ;;  %v663_v46 = vor.u32 %v661_v26, %v660_v37  ;;  %v664_v47 = vrot.slane %v660_v37, 4  ;;  %v677_v50 = vld [vmem:[#allocation2 + $0x30] sm:$0xf] }
  0x6a   : > { %v495_v24 = vstv %s494_s27  ;;  %3803 = vmatpush.bf16.msra.mxu3 %v3719_v3  ;;  %3801 = vmatpush.bf16.msra.mxu2 %v3721_v11  ;;  %v673_v49 = vrot.slane %v668_v38, 4  ;;  %402 = vst [vmem:[#allocation2 + $0xc] sm:$0x1] %v401_v33  ;;  %v681_v51 = vld [vmem:[#allocation2 + $0x38] sm:$0x1]  ;;  %v4570_v52 = vrot.slane %v687_v42, 7  ;;  %v568_v55 = vpack.c.bf16 %v472_v39, %v472_v39 }
  0x6b   : > { %1054 = vmatpush.bf16.msra.mxu0 %v3721_v11  ;;  %1159 = vmatpush.bf16.msra.mxu1 %v3719_v3  ;;  %v496_v53 = vmul.f32 %v495_v24, %v490_v40  ;;  %v497_v54 = vmul.f32 %v495_v24, %v491_v44  ;;  %v427_v56 = vld [vmem:[#allocation2 + $0x44] sm:$0xf]  ;;  %v672_v58 = vsel %vm4563_vm7, %v664_v47, %v671_v48  ;;  %vm1010_vm8 = vcmask 261120   ;;  %v706_v61 = vld [vmem:[#allocation2 + $0x3c] sm:$0xf]  ;;  %v467_v37 = vld [vmem:[%s4486_s10 + $0x58] sm:$0xff] }
  0x6c   : > { %v465_v57 = vld [vmem:[%s4486_s10 + $0x48] sm:$0xff]  ;;  %v678_v59 = vsel %vm4518_vm5, %v663_v46, %v677_v50  ;;  %v682_v60 = vsel %vm4513_vm4, %v673_v49, %v681_v51  ;;  %v428_v62 = vsel %vm4518_vm5, 0, %v427_v56  ;;  %v403_v63 = vld [vmem:[#allocation2 + $0x14] sm:$0xf]  ;;  %v692_v2 = vor.u32 %v690_v43, %v4570_v52  ;;  %680 = vst.msk [vmem:[#allocation2 + $0x34] sm:$0xf] %vm394_vm2, %v672_v58 }
  0x6d   : > { %679 = vst [vmem:[#allocation2 + $0x30] sm:$0xf] %v678_v59  ;;  %v508_v3 = vpack.c.bf16 %v496_v53, %v496_v53  ;;  %v509_v4 = vpack.c.bf16 %v497_v54, %v497_v54  ;;  %v571_v5 = vshrl.u32 %v568_v55, 16  ;;  %v574_v6 = vshll.u32 %v568_v55, 16  ;;  %v457_v14 = vld [vmem:[%s4486_s10 + $0x8] sm:$0xff]  ;;  %p502_p11 = scmp.lt.s32.totalorder %s5488_s7, 1 }
  0x6e   : > { %1310 = vmatpush.bf16.msrb.mxu2 %v3724_v20  ;;  %1540 = vmatpush.bf16.msrb.mxu3 %v3738_v36  ;;  %v481_v7 = vmax.f32 %v465_v57, 0.0  ;;  %v693_v8 = vrot.slane %v4570_v52, 4  ;;  %v404_v9 = vsel %vm4518_vm5, 0, %v403_v63  ;;  %683 = vst [vmem:[#allocation2 + $0x38] sm:$0x1] %v682_v60  ;;  %v707_v10 = vsel %vm4518_vm5, %v692_v2, %v706_v61  ;;  %v466_v36 = vld [vmem:[%s4486_s10 + $0x50] sm:$0xff] }
  0x6f   : > { %1874 = vmatpush.bf16.msrb.mxu0 %v3751_v45  ;;  %v513_v11 = vshrl.u32 %v508_v3, 16  ;;  %v516_v12 = vshll.u32 %v508_v3, 16  ;;  %v521_v13 = vshrl.u32 %v509_v4, 16  ;;  %708 = vst [vmem:[#allocation2 + $0x3c] sm:$0xf] %v707_v10  ;;  %v524_v15 = vshll.u32 %v509_v4, 16 }
  0x70   : > { %v532_v16 = vld [vmem:[#allocation2] sm:$0xf]  ;;  %v4589_v17 = vrot.slane %v571_v5, 7  ;;  %v685_v18 = vpack.c.bf16 %v481_v7, %v481_v7  ;;  %v430_v19 = vld [vmem:[#allocation2 + $0x48] sm:$0x1]  ;;  %v473_v27 = vmax.f32 %v457_v14, 0.0 }
  0x71   : > { %v515_v20 = vrot.slane %v513_v11, 7  ;;  %v523_v21 = vrot.slane %v521_v13, 7  ;;  %v536_v22 = vld [vmem:[#allocation2 + $0x8] sm:$0x1]  ;;  %v590_v23 = vld [vmem:[#allocation2 + $0xc] sm:$0xf] }
  0x72   : > { %vm897_vm9 = vsmask.f32 7424  ;;  %v576_v24 = vor.u32 %v574_v6, %v4589_v17  ;;  %429 = vst [vmem:[#allocation2 + $0x44] sm:$0xf] %v428_v62  ;;  %v695_v25 = vshrl.u32 %v685_v18, 16  ;;  %v698_v26 = vshll.u32 %v685_v18, 16 }
  0x73   : > { %v518_v28 = vor.u32 %v516_v12, %v515_v20  ;;  %v519_v29 = vrot.slane %v515_v20, 4  ;;  %v526_v30 = vor.u32 %v524_v15, %v523_v21  ;;  %v528_v31 = vrot.slane %v523_v21, 4  ;;  %405 = vst [vmem:[#allocation2 + $0x14] sm:$0xf] %v404_v9  ;;  %v406_v44 = vld [vmem:[#allocation2 + $0x18] sm:$0x1] }
  0x74   : > { %v591_v32 = vsel %vm4518_vm5, %v576_v24, %v590_v23  ;;  %v697_v33 = vrot.slane %v695_v25, 7  ;;  %v569_v34 = vpack.c.bf16 %v473_v27, %v473_v27  ;;  %v577_v35 = vrot.slane %v4589_v17, 4  ;;  %v4597_v38 = vld [vmem:[#allocation2 + $0x30] sm:$0xff]  ;;  %s4927_s17 = scalar_select %p502_p11, 1, 0 }
  0x75   : > { %v527_v39 = vsel %vm4563_vm7, %v519_v29, %v526_v30  ;;  %v533_v40 = vsel %vm4518_vm5, %v518_v28, %v532_v16  ;;  %v537_v42 = vsel %vm4513_vm4, %v528_v31, %v536_v22  ;;  %592 = vst [vmem:[#allocation2 + $0xc] sm:$0xf] %v591_v32  ;;  %v431_v43 = vsel %vm4513_vm4, 0, %v430_v19  ;;  %3320 = vmatmul.msk.bf16.vlgmr.msra.gmra.mxu3 %vm1010_vm8, %v4597_v38  ;;  %v458_v57 = vld [vmem:[%s4486_s10 + $0x10] sm:$0xff]  ;;  %v459_v4 = vld [vmem:[%s4486_s10 + $0x18] sm:$0xff]  ;;  %s5496_s24 = sld [smem:[#allocation30_spill]] }
  0x76   : > { %534 = vst [vmem:[#allocation2] sm:$0xf] %v533_v40  ;;  %v700_v45 = vor.u32 %v698_v26, %v697_v33  ;;  %v702_v46 = vrot.slane %v697_v33, 4  ;;  %v579_v47 = vshrl.u32 %v569_v34, 16  ;;  %v582_v48 = vshll.u32 %v569_v34, 16  ;;  %v4609_v49 = vld [vmem:[#allocation2 + $0x38] sm:$0xff]  ;;  %s504_s27 = scvt.s32.f32 %s4927_s17 }
  0x77   : > { %v946_v50 = vshll.u32 %v4597_v38, 16  ;;  %v950_v51 = vshrl.u32 %v4597_v38, 16  ;;  %535 = vst.msk [vmem:[#allocation2 + $0x4] sm:$0xf] %vm394_vm2, %v527_v39  ;;  %v482_v52 = vmax.f32 %v466_v36, 0.0  ;;  %v483_v55 = vmax.f32 %v467_v37, 0.0 }
  0x78   : > { %538 = vst [vmem:[#allocation2 + $0x8] sm:$0x1] %v537_v42  ;;  %v701_v53 = vsel %vm4563_vm7, %v693_v8, %v700_v45  ;;  %v581_v54 = vrot.slane %v579_v47, 7  ;;  %v407_v56 = vsel %vm4513_vm4, 0, %v406_v44  ;;  %v954_v59 = vshll.u32 %v4609_v49, 16  ;;  %v468_v44 = vld [vmem:[%s4486_s10 + $0x60] sm:$0xff] }
  0x79   : > { %v4619_v58 = vrot.slane %v946_v50, 1  ;;  %709 = vst.msk [vmem:[#allocation2 + $0x40] sm:$0xf] %vm394_vm2, %v701_v53  ;;  %v710_v60 = vld [vmem:[#allocation2 + $0x44] sm:$0x1]  ;;  %v713_v61 = vpack.c.bf16 %v482_v52, %v482_v52  ;;  %v714_v7 = vpack.c.bf16 %v483_v55, %v483_v55  ;;  %v474_v13 = vmax.f32 %v458_v57, 0.0 }
  0x7a   : > { %v711_v62 = vsel %vm4513_vm4, %v702_v46, %v710_v60  ;;  %v584_v63 = vor.u32 %v582_v48, %v581_v54  ;;  %v586_v2 = vrot.slane %v581_v54, 4  ;;  %v594_v3 = vld [vmem:[#allocation2 + $0x14] sm:$0x1]  ;;  %432 = vst [vmem:[#allocation2 + $0x48] sm:$0x1] %v431_v43  ;;  %v4627_v6 = vrot.slane %v954_v59, 1 }
  0x7b   : > { %v952_v5 = vor.u32 %v950_v51, %v4619_v58  ;;  %712 = vst [vmem:[#allocation2 + $0x44] sm:$0x1] %v711_v62  ;;  %v716_v8 = vshrl.u32 %v713_v61, 16  ;;  %v433_v9 = vld [vmem:[#allocation2 + $0x50] sm:$0xf]  ;;  %v719_v12 = vshll.u32 %v713_v61, 16  ;;  %v597_v21 = vpack.c.bf16 %v474_v13, %v474_v13 }
  0x7c   : > { %v585_v10 = vsel %vm4563_vm7, %v577_v35, %v584_v63  ;;  %v595_v11 = vsel %vm4513_vm4, %v586_v2, %v594_v3  ;;  %408 = vst [vmem:[#allocation2 + $0x18] sm:$0x1] %v407_v56  ;;  %v724_v16 = vshrl.u32 %v714_v7, 16  ;;  %v436_v17 = vld [vmem:[#allocation2 + $0x54] sm:$0x1]  ;;  %v727_v19 = vshll.u32 %v714_v7, 16 }
  0x7d   : > { %v957_v14 = vsel %vm897_vm9, %v952_v5, %v4627_v6  ;;  %593 = vst.msk [vmem:[#allocation2 + $0x10] sm:$0xf] %vm394_vm2, %v585_v10  ;;  %v718_v15 = vrot.slane %v716_v8, 7  ;;  %v475_v20 = vmax.f32 %v459_v4, 0.0  ;;  %v434_v22 = vsel %vm4518_vm5, 0, %v433_v9  ;;  %v460_v7 = vld [vmem:[%s4486_s10 + $0x20] sm:$0xff] }
  0x7e   : > { %3300 = vmatmul.msk.bf16.vlgmr.msra.gmra.mxu2 %vm1010_vm8, %v957_v14  ;;  %v3786_v18 = vld [vmem:[#allocation2] sm:$0xff]   ;;  %596 = vst [vmem:[#allocation2 + $0x14] sm:$0x1] %v595_v11  ;;  %v726_v28 = vrot.slane %v724_v16, 7  ;;  %v600_v30 = vshrl.u32 %v597_v21, 16  ;;  %v603_v31 = vshll.u32 %v597_v21, 16 }
  0x7f   : > { %v4639_v23 = vld [vmem:[#allocation2 + $0x8] sm:$0xff]  ;;  %v899_v24 = vshrl.u32 %v3786_v18, 16  ;;  %v901_v25 = vshll.u32 %v3786_v18, 16  ;;  %3314 = vmatmul.msk.bf16.vlgmr.msra.gmra.mxu1 %vm1010_vm8, %v3786_v18  ;;  %v721_v26 = vor.u32 %v719_v12, %v718_v15  ;;  %v722_v27 = vrot.slane %v718_v15, 4  ;;  %435 = vst [vmem:[#allocation2 + $0x50] sm:$0xf] %v434_v22 }
  0x80   : > { %v598_v29 = vpack.c.bf16 %v475_v20, %v475_v20  ;;  %v906_v33 = vshll.u32 %v4639_v23, 16  ;;  %v958_v34 = vshrl.u32 %v4609_v49, 16  ;;  %v437_v36 = vsel %vm4513_vm4, 0, %v436_v17  ;;  %v409_v53 = vld [vmem:[#allocation2 + $0x20] sm:$0xf]  ;;  %s5297_s5 = scalar_lea.vmem [#allocation9], %s3234_s8 }
  0x81   : > { %v903_v32 = vrot.slane %v901_v25, 1  ;;  %v735_v35 = vld [vmem:[#allocation2 + $0x48] sm:$0xf]  ;;  %v729_v39 = vor.u32 %v727_v19, %v726_v28  ;;  %v602_v42 = vrot.slane %v600_v30, 7  ;;  %438 = vst [vmem:[#allocation2 + $0x54] sm:$0x1] %v437_v36 }
  0x82   : > { %v4646_v37 = vld [vmem:[#allocation2 + $0x40] sm:$0xff]  ;;  %v736_v40 = vsel %vm4518_vm5, %v721_v26, %v735_v35  ;;  %v608_v43 = vshrl.u32 %v598_v29, 16  ;;  %v908_v46 = vrot.slane %v906_v33, 1  ;;  %v611_v47 = vshll.u32 %v598_v29, 16  ;;  %v439_v18 = vld [vmem:[#allocation2 + $0x5c] sm:$0xf] }
  0x83   : > { %v904_v45 = vor.u32 %v903_v32, %v899_v24  ;;  %737 = vst [vmem:[#allocation2 + $0x48] sm:$0xf] %v736_v40  ;;  %v619_v48 = vld [vmem:[#allocation2 + $0x18] sm:$0xf]  ;;  %v962_v50 = vshll.u32 %v4646_v37, 16  ;;  %v730_v51 = vsel %vm4563_vm7, %v722_v27, %v729_v39  ;;  %v605_v52 = vor.u32 %v603_v31, %v602_v42  ;;  %v469_v19 = vld [vmem:[%s4486_s10 + $0x68] sm:$0xff] }
  0x84   : > { %738 = vst.msk [vmem:[#allocation2 + $0x4c] sm:$0xf] %vm394_vm2, %v730_v51  ;;  %v606_v55 = vrot.slane %v602_v42, 4  ;;  %v610_v56 = vrot.slane %v608_v43, 7  ;;  %v412_v57 = vld [vmem:[#allocation2 + $0x24] sm:$0x1]  ;;  %v960_v2 = vor.u32 %v958_v34, %v4627_v6 }
  0x85   : > { %v909_v54 = vsel %vm897_vm9, %v904_v45, %v908_v46  ;;  %v4657_v59 = vld [vmem:[#allocation2 + $0x10] sm:$0xff]  ;;  %v620_v60 = vsel %vm4518_vm5, %v605_v52, %v619_v48  ;;  %v484_v61 = vmax.f32 %v468_v44, 0.0  ;;  %v731_v62 = vrot.slane %v726_v28, 4  ;;  %3321 = vmatmul.msk.bf16.gmra.mxu3 %vm1010_vm8, %v4609_v49  ;;  %v461_v26 = vld [vmem:[%s4486_s10 + $0x28] sm:$0xff]  ;;  %v415_v27 = vld [vmem:[#allocation2 + $0x2c] sm:$0xf] }
  0x86   : > { %3294 = vmatmul.msk.bf16.vlgmr.msra.gmra.mxu0 %vm1010_vm8, %v909_v54  ;;  %v739_v63 = vld [vmem:[#allocation2 + $0x50] sm:$0x1]  ;;  %v4664_v3 = vrot.slane %v962_v50, 1  ;;  %v613_v4 = vor.u32 %v611_v47, %v610_v56  ;;  %621 = vst [vmem:[#allocation2 + $0x18] sm:$0xf] %v620_v60  ;;  %v410_v5 = vsel %vm4518_vm5, 0, %v409_v53 }
  0x87   : > { %v740_v8 = vsel %vm4513_vm4, %v731_v62, %v739_v63  ;;  %v742_v9 = vpack.c.bf16 %v484_v61, %v484_v61  ;;  %411 = vst [vmem:[#allocation2 + $0x20] sm:$0xf] %v410_v5  ;;  %v910_v10 = vshrl.u32 %v4639_v23, 16  ;;  %v413_v6 = vsel %vm4513_vm4, 0, %v412_v57  ;;  %v3723_v32 = vld [vmem:[%s5493_s14 + $0x20] sm:$0xff]  ;;  %s5497_s8 = sld [smem:[#allocation18_spill]] }
  0x88   : > { %v614_v11 = vsel %vm4563_vm7, %v606_v55, %v613_v4  ;;  %741 = vst [vmem:[#allocation2 + $0x50] sm:$0x1] %v740_v8  ;;  %v914_v12 = vshll.u32 %v4657_v59, 16  ;;  %v476_v15 = vmax.f32 %v460_v7, 0.0  ;;  %v965_v16 = vsel %vm897_vm9, %v960_v2, %v4664_v3  ;;  %v764_v21 = vld [vmem:[#allocation2 + $0x54] sm:$0xf]  ;;  %1311 = vmatpush.bf16.msrb.mxu2 %v3723_v32 }
  0x89   : > { %622 = vst.msk [vmem:[#allocation2 + $0x1c] sm:$0xf] %vm394_vm2, %v614_v11  ;;  %v745_v13 = vshrl.u32 %v742_v9, 16  ;;  %v748_v14 = vshll.u32 %v742_v9, 16  ;;  %v615_v17 = vrot.slane %v610_v56, 4  ;;  %v440_v24 = vsel %vm4518_vm5, 0, %v439_v18 }
  0x8a   : > { %414 = vst [vmem:[#allocation2 + $0x24] sm:$0x1] %v413_v6  ;;  %v626_v22 = vpack.c.bf16 %v476_v15, %v476_v15  ;;  %v485_v25 = vmax.f32 %v469_v19, 0.0  ;;  %v477_v28 = vmax.f32 %v461_v26, 0.0  ;;  %v912_v29 = vor.u32 %v910_v10, %v908_v46  ;;  %v3737_v7 = vld [vmem:[%s5493_s14 + $0x30] sm:$0xff]  ;;  %v3750_v6 = vld [vmem:[%s5493_s14 + $0x40] sm:$0xff] }
  0x8b   : > { %v747_v20 = vrot.slane %v745_v13, 7  ;;  %441 = vst [vmem:[#allocation2 + $0x5c] sm:$0xf] %v440_v24  ;;  %v4685_v30 = vrot.slane %v914_v12, 1  ;;  %v4692_v34 = vld [vmem:[#allocation2 + $0x48] sm:$0xff]  ;;  %v416_v40 = vsel %vm4518_vm5, 0, %v415_v27  ;;  %1541 = vmatpush.bf16.msrb.mxu3 %v3737_v7  ;;  %1875 = vmatpush.bf16.msrb.mxu0 %v3750_v6 }
  0x8c   : > { %v629_v33 = vshrl.u32 %v626_v22, 16  ;;  %v632_v36 = vshll.u32 %v626_v22, 16  ;;  %v743_v39 = vpack.c.bf16 %v485_v25, %v485_v25  ;;  %v627_v42 = vpack.c.bf16 %v477_v28, %v477_v28  ;;  %417 = vst [vmem:[#allocation2 + $0x2c] sm:$0xf] %v416_v40  ;;  %v470_v15 = vld [vmem:[%s4486_s10 + $0x70] sm:$0xff]  ;;  %v3780_v6 = vld [vmem:[%s5493_s14 + $0x78] sm:$0xff] }
  0x8d   : > { %v750_v31 = vor.u32 %v748_v14, %v747_v20  ;;  %v966_v50 = vshrl.u32 %v4646_v37, 16  ;;  %v917_v53 = vsel %vm897_vm9, %v912_v29, %v4685_v30  ;;  %v970_v54 = vshll.u32 %v4692_v34, 16  ;;  %s3697_s29 = sshll.u32 %s5497_s8, 5  ;;  %s5498_s15 = sld [smem:[#allocation31_spill]] }
  0x8e   : > { %3301 = vmatmul.msk.bf16.gmra.mxu2 %vm1010_vm8, %v965_v16  ;;  %v623_v35 = vld [vmem:[#allocation2 + $0x20] sm:$0x1]  ;;  %v631_v45 = vrot.slane %v629_v33, 7  ;;  %v753_v46 = vshrl.u32 %v743_v39, 16  ;;  %v756_v47 = vshll.u32 %v743_v39, 16  ;;  %v637_v48 = vshrl.u32 %v627_v42, 16 }
  0x8f   : > { %3315 = vmatmul.msk.bf16.gmra.mxu1 %vm1010_vm8, %v4639_v23  ;;  %v765_v43 = vsel %vm4518_vm5, %v750_v31, %v764_v21  ;;  %v624_v44 = vsel %vm4513_vm4, %v615_v17, %v623_v35  ;;  %v751_v55 = vrot.slane %v747_v20, 4  ;;  %v640_v62 = vshll.u32 %v627_v42, 16  ;;  %v442_v17 = vld [vmem:[#allocation2 + $0x60] sm:$0x1]  ;;  %2613 = vmatpush.bf16.msra.mxu3 %v3780_v6  ;;  %s3065_s18 = sshll.u32 %s5297_s5, 4  ;;  %s3066_s18 = int_to_ptr.vmem [resolvable:$true] %s3065_s18 }
  0x90   : > { %766 = vst [vmem:[#allocation2 + $0x54] sm:$0xf] %v765_v43  ;;  %v634_v51 = vor.u32 %v632_v36, %v631_v45  ;;  %v755_v56 = vrot.slane %v753_v46, 7  ;;  %v639_v61 = vrot.slane %v637_v48, 7  ;;  %v635_v4 = vrot.slane %v631_v45, 4  ;;  %v4707_v5 = vld [vmem:[#allocation2 + $0x18] sm:$0xff] }
  0x91   : > { %625 = vst [vmem:[#allocation2 + $0x20] sm:$0x1] %v624_v44  ;;  %v648_v52 = vld [vmem:[#allocation2 + $0x24] sm:$0xf]  ;;  %v968_v10 = vor.u32 %v966_v50, %v4664_v3  ;;  %v972_v11 = vrot.slane %v970_v54, 1  ;;  %v486_v18 = vmax.f32 %v470_v15, 0.0 }
  0x92   : > { %v649_v57 = vsel %vm4518_vm5, %v634_v51, %v648_v52  ;;  %v768_v60 = vld [vmem:[#allocation2 + $0x5c] sm:$0x1]  ;;  %v758_v63 = vor.u32 %v756_v47, %v755_v56  ;;  %v760_v2 = vrot.slane %v755_v56, 4  ;;  %v642_v8 = vor.u32 %v640_v62, %v639_v61 }
  0x93   : > { %650 = vst [vmem:[#allocation2 + $0x24] sm:$0xf] %v649_v57  ;;  %v644_v9 = vrot.slane %v639_v61, 4  ;;  %v652_v14 = vld [vmem:[#allocation2 + $0x2c] sm:$0x1]  ;;  %v443_v19 = vsel %vm4513_vm4, 0, %v442_v17  ;;  %v771_v20 = vpack.c.bf16 %v486_v18, %v486_v18  ;;  %v973_v21 = vsel %vm897_vm9, %v968_v10, %v972_v11 }
  0x94   : > { %v759_v12 = vsel %vm4563_vm7, %v751_v55, %v758_v63  ;;  %v769_v13 = vsel %vm4513_vm4, %v760_v2, %v768_v60  ;;  %v643_v16 = vsel %vm4563_vm7, %v635_v4, %v642_v8  ;;  %v918_v22 = vshrl.u32 %v4657_v59, 16  ;;  %444 = vst [vmem:[#allocation2 + $0x60] sm:$0x1] %v443_v19  ;;  %v3767_v2 = vld [vmem:[%s5493_s14 + $0x68] sm:$0xff]  ;;  %v3752_v17 = vld [vmem:[%s5493_s14 + $0x50] sm:$0xff]  ;;  %s4074_s1 = scalar_lea.hbm %s5498_s15, 512 }
  0x95   : > { %3322 = vmatmul.msk.bf16.gmra.mxu3 %vm1010_vm8, %v4646_v37  ;;  %767 = vst.msk [vmem:[#allocation2 + $0x58] sm:$0xf] %vm394_vm2, %v759_v12  ;;  %v653_v3 = vsel %vm4513_vm4, %v644_v9, %v652_v14  ;;  %v922_v24 = vshll.u32 %v4707_v5, 16  ;;  %v774_v25 = vshrl.u32 %v771_v20, 16  ;;  %v777_v31 = vshll.u32 %v771_v20, 16  ;;  %2279 = vmatpush.bf16.msra.mxu2 %v3767_v2  ;;  %v3753_v12 = vld [vmem:[%s5493_s14 + $0x58] sm:$0xff] }
  0x96   : > { %3295 = vmatmul.msk.bf16.gmra.mxu0 %vm1010_vm8, %v917_v53  ;;  %770 = vst [vmem:[#allocation2 + $0x5c] sm:$0x1] %v769_v13  ;;  %v920_v26 = vor.u32 %v918_v22, %v4685_v30  ;;  %v974_v35 = vshrl.u32 %v4692_v34, 16  ;;  %v926_v45 = vshrl.u32 %v4707_v5, 16  ;;  %v1232_v15 = vrot.slane %v4639_v23, 1  ;;  %2049 = vmatpush.bf16.msrb.mxu1 %v3753_v12  ;;  %v1627_v20 = vld [vmem:[#allocation2 + $0xc] sm:$0xff]  }
  0x97   : > { %651 = vst.msk [vmem:[#allocation2 + $0x28] sm:$0xf] %vm394_vm2, %v643_v16  ;;  %v924_v27 = vrot.slane %v922_v24, 1  ;;  %v4738_v28 = vld [vmem:[#allocation2 + $0x50] sm:$0xff]  ;;  %v4740_v29 = vrot.slane %v774_v25, 7  ;;  %v3782_v16 = vld [vmem:[%s5493_s14 + $0x88] sm:$0xff] }
  0x98   : > { %654 = vst [vmem:[#allocation2 + $0x2c] sm:$0x1] %v653_v3  ;;  %v978_v36 = vshll.u32 %v4738_v28, 16  ;;  %v976_v40 = vor.u32 %v974_v35, %v972_v11  ;;  %v982_v52 = vshrl.u32 %v4738_v28, 16  ;;  %v1234_v3 = vrot.slane %v4657_v59, 1  ;;  %2788 = vmatpush.bf16.msra.mxu0 %v3782_v16 }
  0x99   : > { %v779_v32 = vor.u32 %v777_v31, %v4740_v29  ;;  %v925_v33 = vsel %vm897_vm9, %v920_v26, %v924_v27  ;;  %v928_v47 = vor.u32 %v926_v45, %v924_v27  ;;  %vm1230_vm10 = vcmask 1046528   ;;  %v3962_v22 = vld [vmem:[#allocation2 + $0xc] sm:$0xe]  ;;  %v3793_v24 = vld [vmem:[#allocation2] sm:$0xf0] }
  0x9a   : > { %v980_v42 = vrot.slane %v978_v36, 1  ;;  %v4751_v43 = vld [vmem:[#allocation2 + $0x20] sm:$0xff]  ;;  %v1235_v18 = vsel %vm1230_vm10, %v1232_v15, %v1234_v3  ;;  %2050 = vmatpush.bf16.msrb.mxu1 %v3752_v17  ;;  %v3725_v27 = vld [vmem:[#allocation2 + $0xc] sm:$0xff]  ;;  %v1723_v36 = vshll.u32 %v1627_v20, 16  ;;  %vm2919_vm11 = vcmask 130048  }
  0x9b   : > { %v793_v39 = vld [vmem:[#allocation2 + $0x60] sm:$0xf]  ;;  %v930_v46 = vshll.u32 %v4751_v43, 16  ;;  %v934_v61 = vshrl.u32 %v4751_v43, 16 }
  0x9c   : > { %v794_v30 = vsel %vm4518_vm5, %v779_v32, %v793_v39  ;;  %v981_v44 = vsel %vm897_vm9, %v976_v40, %v980_v42  ;;  %v984_v54 = vor.u32 %v982_v52, %v980_v42  ;;  %v3794_v25 = vld [vmem:[#allocation2] sm:$0xe]  ;;  %v1721_v42 = vshrl.u32 %v1627_v20, 16 }
  0x9d   : > { %795 = vst [vmem:[#allocation2 + $0x60] sm:$0xf] %v794_v30  ;;  %v932_v48 = vrot.slane %v930_v46, 1  ;;  %v4759_v50 = vld [vmem:[#allocation2 + $0x58] sm:$0xff]  ;;  %v3795_v31 = vor.u32 %v3794_v25, %v3793_v24 }
  0x9e   : > { %3302 = vmatmul.msk.bf16.gmra.mxu2 %vm1010_vm8, %v973_v21  ;;  %v986_v53 = vshll.u32 %v4759_v50, 16  ;;  %v990_v10 = vshrl.u32 %v4759_v50, 16  ;;  %v3961_v21 = vld [vmem:[#allocation2 + $0xc] sm:$0xf0]  ;;  %v3740_v52 = vld [vmem:[#allocation2 + $0x1c] sm:$0xff]  ;;  %v3741_v2 = vld [vmem:[#allocation2 + $0x24] sm:$0xff] }
  0x9f   : > { %3316 = vmatmul.msk.bf16.gmra.mxu1 %vm1010_vm8, %v4657_v59  ;;  %v933_v51 = vsel %vm897_vm9, %v928_v47, %v932_v48  ;;  %v4767_v56 = vld [vmem:[#allocation2 + $0x28] sm:$0xff]  ;;  %v936_v4 = vor.u32 %v934_v61, %v932_v48  ;;  %v3963_v32 = vor.u32 %v3962_v22, %v3961_v21  ;;  %v1231_v35 = vrot.slane %v3795_v31, 1 }
  0xa0   : > { %v988_v55 = vrot.slane %v986_v53, 1  ;;  %v938_v62 = vshll.u32 %v4767_v56, 16  ;;  %v942_v23 = vshrl.u32 %v4767_v56, 16  ;;  %v1973_v53 = vrot.slane %v3740_v52, 1  ;;  %v3742_v21 = vld [vmem:[#allocation2 + $0x2c] sm:$0xff] }
  0xa1   : > { %v1970_v39 = vrot.slane %v3963_v32, 1  ;;  %v1233_v40 = vsel %vm1230_vm10, %v1231_v35, %v1232_v15  ;;  %v1744_v6 = vshll.u32 %v3741_v2, 16  ;;  %v1238_v22 = vrot.slane %v4751_v43, 1 }
  0xa2   : > { %v989_v60 = vsel %vm897_vm9, %v984_v54, %v988_v55  ;;  %v940_v7 = vrot.slane %v938_v62, 1  ;;  %v992_v13 = vor.u32 %v990_v10, %v988_v55  ;;  %v1736_v55 = vshll.u32 %v3740_v52, 16 }
  0xa3   : > { %v1746_v15 = vrot.slane %v1744_v6, 1  ;;  %v1748_v32 = vshrl.u32 %v3741_v2, 16 }
  0xa4   : > { %v828_v57 = vld [vmem:[#allocation2 + $0x60] sm:$0x1]  ;;  %v941_v9 = vsel %vm897_vm9, %v936_v4, %v940_v7  ;;  %v944_v59 = vor.u32 %v942_v23, %v940_v7  ;;  %v1738_v61 = vrot.slane %v1736_v55, 1  ;;  %v1236_v4 = vrot.slane %v4707_v5, 1  ;;  %v3728_v23 = vld [vmem:[#allocation2 + $0x24] sm:$0xff] }
  0xa5   : > { %3323 = vmatmul.msk.bf16.gmra.mxu3 %vm1010_vm8, %v4692_v34  ;;  %v883_v63 = vunpack.c.l.b16 %v828_v57  ;;  %v1975_v7 = vrot.slane %v3741_v2, 1 }
  0xa6   : > { %3296 = vmatmul.msk.bf16.gmra.mxu0 %vm1010_vm8, %v925_v33  ;;  %v949_v26 = vsel %vm897_vm9, %v944_v59, %v4619_v58  ;;  %v3739_v33 = vld [vmem:[#allocation2 + $0x14] sm:$0xff]  ;;  %v1237_v10 = vsel %vm1230_vm10, %v1234_v3, %v1236_v4  ;;  %v1977_v59 = vrot.slane %v3742_v21, 1  ;;  %v1239_v31 = vsel %vm1230_vm10, %v1236_v4, %v1238_v22 }
  0xa7   : > { %v4778_v8 = vpack.c.b16 %v883_v63, %v883_v63  ;;  %v1971_v30 = vrot.slane %v3739_v33, 1  ;;  %v1728_v45 = vshll.u32 %v3739_v33, 16  ;;  %v1732_v54 = vshrl.u32 %v3739_v33, 16  ;;  %v3727_v63 = vld [vmem:[#allocation2 + $0x1c] sm:$0xff] }
  0xa8   : > { %v1752_v33 = vshll.u32 %v3742_v21, 16 }
  0xa9   : > { %v994_v11 = vshll.u32 %v4778_v8, 16  ;;  %v1972_v46 = vsel %vm1230_vm10, %v1970_v39, %v1971_v30  ;;  %v1730_v47 = vrot.slane %v1728_v45, 1  ;;  %v1974_v57 = vsel %vm1230_vm10, %v1971_v30, %v1973_v53 }
  0xaa   : > { %v1978_v39 = vsel %vm1230_vm10, %v1975_v7, %v1977_v59  ;;  %v1750_v30 = vor.u32 %v1748_v32, %v1746_v15 }
  0xab   : > { %v996_v14 = vrot.slane %v994_v11, 1  ;;  %v1740_v11 = vshrl.u32 %v3740_v52, 16  ;;  %v1240_v52 = vrot.slane %v4767_v56, 1 }
  0xad   : > { %v997_v19 = vsel %vm897_vm9, %v992_v13, %v996_v14  ;;  %v1976_v13 = vsel %vm1230_vm10, %v1973_v53, %v1975_v7  ;;  %v1742_v14 = vor.u32 %v1740_v11, %v1738_v61 }
  0xae   : > { %3303 = vmatmul.msk.bf16.gmra.mxu2 %vm1010_vm8, %v981_v44  ;;  %v1725_v44 = vrot.slane %v1723_v36, 1 }
  0xaf   : > { %3317 = vmatmul.msk.bf16.gmra.mxu1 %vm1010_vm8, %v4707_v5 }
  0xb0   : > { %v1726_v58 = vor.u32 %v1725_v44, %v1721_v42 }
  0xb2   : > { %v1731_v48 = vsel %vm897_vm9, %v1726_v58, %v1730_v47  ;;  %v3729_v58 = vld [vmem:[#allocation2 + $0x2c] sm:$0xff] }
  0xb5   : > { %3324 = vmatmul.msk.bf16.gmra.mxu3 %vm1010_vm8, %v4738_v28 }
  0xb6   : > { %3297 = vmatmul.msk.bf16.gmra.mxu0 %vm1010_vm8, %v933_v51  ;;  %v3726_v51 = vld [vmem:[#allocation2 + $0x14] sm:$0xff] }
  0xbe   : > { %3304 = vmatmul.msk.bf16.gmra.mxu2 %vm1010_vm8, %v989_v60  ;;  %v1734_v60 = vor.u32 %v1732_v54, %v1730_v47 }
  0xbf   : > { %3318 = vmatmul.msk.bf16.gmra.mxu1 %vm1010_vm8, %v4751_v43 }
  0xc0   : > { %v1739_v62 = vsel %vm897_vm9, %v1734_v60, %v1738_v61  ;;  %v1241_v61 = vsel %vm1230_vm10, %v1238_v22, %v1240_v52 }
  0xc5   : > { %3325 = vmatmul.msk.bf16.gmra.mxu3 %vm1010_vm8, %v4759_v50 }
  0xc6   : > { %3298 = vmatmul.msk.bf16.gmra.mxu0 %vm1010_vm8, %v941_v9 }
  0xce   : > { %3305 = vmatmul.msk.bf16.gmra.mxu2 %vm1010_vm8, %v997_v19  ;;  %v1747_v19 = vsel %vm897_vm9, %v1742_v14, %v1746_v15  ;;  %v3730_v14 = vld [vmem:[#allocation2 + $0x34] sm:$0xff] }
  0xcf   : > { %3319 = vmatmul.msk.bf16.gmra.mxu1 %vm1010_vm8, %v4767_v56 }
  0xd5   : > { %3410 = vmatmul.msk.bf16.vlgmr.msrb.gmra.mxu3 %vm1010_vm8, %v3725_v27 }
  0xd6   : > { %3299 = vmatmul.msk.bf16.gmra.mxu0 %vm1010_vm8, %v949_v26 }
  0xde   : > { %3338 = vmatmul.msk.bf16.vlgmr.msrb.gmra.mxu2 %vm1010_vm8, %v1233_v40  ;;  %v1754_v40 = vrot.slane %v1752_v33, 1 }
  0xdf   : > { %3502 = vmatmul.msk.bf16.vlgmr.msrb.gmra.mxu1 %vm1010_vm8, %v1972_v46 }
  0xe0   : > { %v1755_v46 = vsel %vm897_vm9, %v1750_v30, %v1754_v40 }
  0xe5   : > { %3411 = vmatmul.msk.bf16.gmra.mxu3 %vm1010_vm8, %v3726_v51  ;;  %v3743_v51 = vld [vmem:[#allocation2 + $0x34] sm:$0xff] }
  0xe6   : > { %3478 = vmatmul.msk.bf16.vlgmr.msrb.gmra.mxu0 %vm1010_vm8, %v1731_v48  ;;  %v1979_v53 = vrot.slane %v3743_v51, 1 }
  0xe8   : > { %v1980_v7 = vsel %vm1230_vm10, %v1977_v59, %v1979_v53 }
  0xee   : > { %3339 = vmatmul.msk.bf16.gmra.mxu2 %vm1010_vm8, %v1235_v18 }
  0xef   : > { %3503 = vmatmul.msk.bf16.gmra.mxu1 %vm1010_vm8, %v1974_v57 }
  0xf5   : > { %3412 = vmatmul.msk.bf16.gmra.mxu3 %vm1010_vm8, %v3727_v63  ;;  %v1760_v63 = vshll.u32 %v3743_v51, 16 }
  0xf6   : > { %3479 = vmatmul.msk.bf16.gmra.mxu0 %vm1010_vm8, %v1739_v62  ;;  %v1756_v62 = vshrl.u32 %v3742_v21, 16 }
  0xf8   : > { %v1191_v9 = vpop.f32.mrf.mxu3 }
  0xfc   : > { %v1161_v12 = vpop.f32.mrf.mxu1 }
  0xfe   : > { %3340 = vmatmul.msk.bf16.gmra.mxu2 %vm1010_vm8, %v1237_v10  ;;  %v1762_v10 = vrot.slane %v1760_v63, 1 }
  0xff   : > { %3504 = vmatmul.msk.bf16.gmra.mxu1 %vm1010_vm8, %v1976_v13 }
 0x100   : > { %v1193_v18 = vpop.f32.mrf.mxu3 }
 0x101   : > { %v1086_v16 = vpop.f32.mrf.mxu2 }
 0x102   : > { %v4828_v17 = vadd.f32 %v1191_v9, %v1086_v16  ;;  %v1758_v9 = vor.u32 %v1756_v62, %v1754_v40 }
 0x103   : > { %v1056_v5 = vpop.f32.mrf.mxu0 }
 0x104   : > { %v4831_v3 = vadd.f32 %v1161_v12, %v1056_v5  ;;  %v1163_v20 = vpop.f32.mrf.mxu1  ;;  %v1763_v13 = vsel %vm897_vm9, %v1758_v9, %v1762_v10  ;;  %v3744_v5 = vld [vmem:[#allocation2 + $0x3c] sm:$0xff] }
 0x105   : > { %3413 = vmatmul.msk.bf16.gmra.mxu3 %vm1010_vm8, %v3728_v23  ;;  %v1242_v23 = vrot.slane %v4597_v38, 1  ;;  %v3781_v38 = vld [vmem:[%s5493_s14 + $0x80] sm:$0xff] }
 0x106   : > { %3480 = vmatmul.msk.bf16.gmra.mxu0 %vm1010_vm8, %v1747_v19  ;;  %v3779_v19 = vld [vmem:[%s5493_s14 + $0x70] sm:$0xff] }
 0x107   : > { %2614 = vmatpush.bf16.msra.mxu3 %v3779_v19  ;;  %2789 = vmatpush.bf16.msra.mxu0 %v3781_v38 }
 0x108   : > { %v1196_v26 = vpop.f32.mrf.mxu3 }
 0x109   : > { %v1088_v24 = vpop.f32.mrf.mxu2 }
 0x10a   : > { %v4836_v25 = vadd.f32 %v1193_v18, %v1088_v24  ;;  %v3766_v18 = vld [vmem:[%s5493_s14 + $0x60] sm:$0xff] }
 0x10b   : > { %v1058_v27 = vpop.f32.mrf.mxu0  ;;  %2280 = vmatpush.bf16.msra.mxu2 %v3766_v18 }
 0x10c   : > { %v4839_v35 = vadd.f32 %v1163_v20, %v1058_v27  ;;  %v1166_v36 = vpop.f32.mrf.mxu1  ;;  %v1981_v20 = vrot.slane %v3744_v5, 1  ;;  %v1764_v27 = vshrl.u32 %v3743_v51, 16 }
 0x10e   : > { %3341 = vmatmul.msk.bf16.gmra.mxu2 %vm1010_vm8, %v1239_v31  ;;  %v1768_v31 = vshll.u32 %v3744_v5, 16 }
 0x10f   : > { %3505 = vmatmul.msk.bf16.gmra.mxu1 %vm1010_vm8, %v1978_v39  ;;  %v1766_v39 = vor.u32 %v1764_v27, %v1762_v10 }
 0x110   : > { %v1198_v44 = vpop.f32.mrf.mxu3  ;;  %v1770_v30 = vrot.slane %v1768_v31, 1 }
 0x111   : > { %v1091_v43 = vpop.f32.mrf.mxu2 }
 0x112   : > { %v4844_v42 = vadd.f32 %v1196_v26, %v1091_v43  ;;  %v1243_v26 = vsel %vm1230_vm10, %v1240_v52, %v1242_v23  ;;  %v3745_v52 = vld [vmem:[#allocation2 + $0x44] sm:$0xff] }
 0x113   : > { %v1061_v45 = vpop.f32.mrf.mxu0 }
 0x114   : > { %v4847_v47 = vadd.f32 %v1166_v36, %v1061_v45  ;;  %v1168_v48 = vpop.f32.mrf.mxu1  ;;  %v1982_v36 = vsel %vm1230_vm10, %v1979_v53, %v1981_v20  ;;  %v1244_v53 = vrot.slane %v4609_v49, 1 }
 0x115   : > { %3414 = vmatmul.msk.bf16.gmra.mxu3 %vm1010_vm8, %v3729_v58  ;;  %v3731_v58 = vld [vmem:[#allocation2 + $0x3c] sm:$0xff] }
 0x116   : > { %3481 = vmatmul.msk.bf16.gmra.mxu0 %vm1010_vm8, %v1755_v46  ;;  %v1771_v46 = vsel %vm897_vm9, %v1766_v39, %v1770_v30  ;;  %v1245_v63 = vsel %vm1230_vm10, %v1242_v23, %v1244_v53 }
 0x118   : > { %v1201_v57 = vpop.f32.mrf.mxu3 }
 0x119   : > { %v1093_v54 = vpop.f32.mrf.mxu2 }
 0x11a   : > { %v4852_v55 = vadd.f32 %v1198_v44, %v1093_v54  ;;  %v1983_v54 = vrot.slane %v3745_v52, 1 }
 0x11b   : > { %v1063_v60 = vpop.f32.mrf.mxu0 }
 0x11c   : > { %v4855_v2 = vadd.f32 %v1168_v48, %v1063_v60  ;;  %v1171_v4 = vpop.f32.mrf.mxu1 }
 0x11e   : > { %3342 = vmatmul.msk.bf16.gmra.mxu2 %vm1010_vm8, %v1241_v61 }
 0x11f   : > { %3506 = vmatmul.msk.bf16.gmra.mxu1 %vm1010_vm8, %v1980_v7  ;;  %v1776_v7 = vshll.u32 %v3745_v52, 16 }
 0x120   : > { %v1203_v6 = vpop.f32.mrf.mxu3 }
 0x121   : > { %v1096_v56 = vpop.f32.mrf.mxu2 }
 0x122   : > { %v4860_v11 = vadd.f32 %v1201_v57, %v1096_v56  ;;  %v1984_v56 = vsel %vm1230_vm10, %v1981_v20, %v1983_v54  ;;  %v4907_v20 = vld [vmem:[#allocation2 + $0x4c] sm:$0xff] }
 0x123   : > { %v1066_v12 = vpop.f32.mrf.mxu0  ;;  %v1784_v38 = vshll.u32 %v4907_v20, 16 }
 0x124   : > { %v4863_v15 = vadd.f32 %v1171_v4, %v1066_v12  ;;  %v1173_v16 = vpop.f32.mrf.mxu1  ;;  %v1772_v4 = vshrl.u32 %v3744_v5, 16  ;;  %v1778_v12 = vrot.slane %v1776_v7, 1  ;;  %v3732_v5 = vld [vmem:[#allocation2 + $0x44] sm:$0xff] }
 0x125   : > { %3415 = vmatmul.msk.bf16.gmra.mxu3 %vm1010_vm8, %v3730_v14 }
 0x126   : > { %3482 = vmatmul.msk.bf16.gmra.mxu0 %vm1010_vm8, %v1763_v13 }
 0x128   : > { %v1206_v59 = vpop.f32.mrf.mxu3 }
 0x129   : > { %v1098_v21 = vpop.f32.mrf.mxu2 }
 0x12a   : > { %v4874_v22 = vadd.f32 %v1203_v6, %v1098_v21  ;;  %v1774_v6 = vor.u32 %v1772_v4, %v1770_v30  ;;  %v1246_v21 = vrot.slane %v4646_v37, 1  ;;  %v445_v37 = vld [vmem:[#allocation2 + $0x68] sm:$0xf]  ;;  %v3733_v4 = vld [vmem:[#allocation2 + $0x4c] sm:$0xff] }
 0x12b   : > { %v1068_v24 = vpop.f32.mrf.mxu0 }
 0x12c   : > { %v4877_v32 = vadd.f32 %v1173_v16, %v1068_v24  ;;  %v1176_v33 = vpop.f32.mrf.mxu1  ;;  %v1779_v18 = vsel %vm897_vm9, %v1774_v6, %v1778_v12  ;;  %v780_v6 = vrot.slane %v4740_v29, 4  ;;  %v498_v29 = vld [vmem:[%s339_s28] sm:$0xff] }
 0x12e   : > { %3343 = vmatmul.msk.bf16.gmra.mxu2 %vm1010_vm8, %v1243_v26 }
 0x12f   : > { %3507 = vmatmul.msk.bf16.gmra.mxu1 %vm1010_vm8, %v1982_v36  ;;  %v1780_v36 = vshrl.u32 %v3745_v52, 16 }
 0x130   : > { %v1208_v44 = vpop.f32.mrf.mxu3 }
 0x131   : > { %v1101_v40 = vpop.f32.mrf.mxu2 }
 0x132   : > { %v4885_v43 = vadd.f32 %v1206_v59, %v1101_v40  ;;  %v1985_v59 = vrot.slane %v4907_v20, 1  ;;  %v471_v40 = vld [vmem:[%s4486_s10 + $0x78] sm:$0xff] }
 0x133   : > { %v1071_v45 = vpop.f32.mrf.mxu0 }
 0x134   : > { %v4888_v48 = vadd.f32 %v1176_v33, %v1071_v45  ;;  %v1178_v51 = vpop.f32.mrf.mxu1  ;;  %v1247_v33 = vsel %vm1230_vm10, %v1244_v53, %v1246_v21  ;;  %v1986_v30 = vsel %vm1230_vm10, %v1983_v54, %v1985_v59  ;;  %v446_v45 = vsel %vm4518_vm5, 0, %v445_v37 }
 0x135   : > { %3416 = vmatmul.msk.bf16.gmra.mxu3 %vm1010_vm8, %v3731_v58  ;;  %v1782_v58 = vor.u32 %v1780_v36, %v1778_v12  ;;  %447 = vst [vmem:[#allocation2 + $0x68] sm:$0xf] %v446_v45 }
 0x136   : > { %3483 = vmatmul.msk.bf16.gmra.mxu0 %vm1010_vm8, %v1771_v46 }
 0x138   : > { %v1211_v61 = vpop.f32.mrf.mxu3 }
 0x139   : > { %v1103_v57 = vpop.f32.mrf.mxu2 }
 0x13a   : > { %v4893_v60 = vadd.f32 %v1208_v44, %v1103_v57  ;;  %v487_v44 = vmax.f32 %v471_v40, 0.0  ;;  %v448_v40 = vld [vmem:[#allocation2 + $0x6c] sm:$0x1] }
 0x13b   : > { %v1073_v62 = vpop.f32.mrf.mxu0 }
 0x13c   : > { %v4896_v9 = vadd.f32 %v1178_v51, %v1073_v62  ;;  %v1181_v10 = vpop.f32.mrf.mxu1  ;;  %v1786_v51 = vrot.slane %v1784_v38, 1  ;;  %v772_v52 = vpack.c.bf16 %v487_v44, %v487_v44  ;;  %v4952_v38 = vstv %s504_s27 }
 0x13e   : > { %3344 = vmatmul.msk.bf16.gmra.mxu2 %vm1010_vm8, %v1245_v63  ;;  %v782_v57 = vshrl.u32 %v772_v52, 16  ;;  %v1787_v63 = vsel %vm897_vm9, %v1782_v58, %v1786_v51 }
 0x13f   : > { %3508 = vmatmul.msk.bf16.gmra.mxu1 %vm1010_vm8, %v1984_v56  ;;  %v785_v56 = vshll.u32 %v772_v52, 16  ;;  %v449_v52 = vsel %vm4513_vm4, 0, %v448_v40 }
 0x140   : > { %v1213_v14 = vpop.f32.mrf.mxu3  ;;  %v784_v7 = vrot.slane %v782_v57, 7  ;;  %450 = vst [vmem:[#allocation2 + $0x6c] sm:$0x1] %v449_v52 }
 0x141   : > { %v1106_v49 = vpop.f32.mrf.mxu2 }
 0x142   : > { %v4901_v13 = vadd.f32 %v1211_v61, %v1106_v49  ;;  %v789_v12 = vrot.slane %v784_v7, 4  ;;  %v4937_v49 = vld [vmem:[#allocation2 + $0x54] sm:$0xff] }
 0x143   : > { %v1076_v16 = vpop.f32.mrf.mxu0  ;;  %v1792_v58 = vshll.u32 %v4937_v49, 16 }
 0x144   : > { %v4904_v19 = vadd.f32 %v1181_v10, %v1076_v16  ;;  %v1183_v23 = vpop.f32.mrf.mxu1  ;;  %v787_v16 = vor.u32 %v785_v56, %v784_v7 }
 0x145   : > { %3417 = vmatmul.msk.bf16.gmra.mxu3 %vm1010_vm8, %v3732_v5  ;;  %v1248_v5 = vrot.slane %v4692_v34, 1 }
 0x146   : > { %3484 = vmatmul.msk.bf16.gmra.mxu0 %vm1010_vm8, %v1779_v18  ;;  %v797_v18 = vld [vmem:[#allocation2 + $0x68] sm:$0x1] }
 0x147   : > { %v1249_v45 = vsel %vm1230_vm10, %v1246_v21, %v1248_v5  ;;  %v1794_v21 = vrot.slane %v1792_v58, 1 }
 0x148   : > { %v1216_v27 = vpop.f32.mrf.mxu3 }
 0x149   : > { %v1108_v24 = vpop.f32.mrf.mxu2 }
 0x14a   : > { %v4912_v26 = vadd.f32 %v1213_v14, %v1108_v24  ;;  %v3783_v14 = vld [vmem:[%s5496_s24] sm:$0xff]  ;;  %v1987_v24 = vrot.slane %v4937_v49, 1 }
 0x14b   : > { %v1078_v31 = vpop.f32.mrf.mxu0  ;;  %2963 = vmatpush.bf16.msra.mxu1 %v3783_v14 }
 0x14c   : > { %v4916_v39 = vadd.f32 %v1183_v23, %v1078_v31  ;;  %v1186_v46 = vpop.f32.mrf.mxu1  ;;  %v798_v23 = vsel %vm4513_vm4, %v789_v12, %v797_v18  ;;  %v500_v31 = vmax.f32 %v498_v29, 0.0  ;;  %v1988_v57 = vsel %vm1230_vm10, %v1985_v59, %v1987_v24  ;;  %v561_v18 = vld [vmem:[#allocation2 + $0x6c] sm:$0xf] }
 0x14d   : > { %799 = vst [vmem:[#allocation2 + $0x68] sm:$0x1] %v798_v23 }
 0x14e   : > { %3345 = vmatmul.msk.bf16.gmra.mxu2 %vm1010_vm8, %v1247_v33  ;;  %v506_v37 = vmul.f32 %v4952_v38, %v500_v31 }
 0x14f   : > { %3509 = vmatmul.msk.bf16.gmra.mxu1 %vm1010_vm8, %v1986_v30 }
 0x150   : > { %v1218_v61 = vpop.f32.mrf.mxu3 }
 0x151   : > { %v1111_v53 = vpop.f32.mrf.mxu2 }
 0x152   : > { %v4929_v54 = vadd.f32 %v1216_v27, %v1111_v53  ;;  %v788_v27 = vsel %vm4563_vm7, %v780_v6, %v787_v16  ;;  %v3734_v16 = vld [vmem:[#allocation2 + $0x54] sm:$0xff] }
 0x153   : > { %v1081_v62 = vpop.f32.mrf.mxu0  ;;  %796 = vst.msk [vmem:[#allocation2 + $0x64] sm:$0xf] %vm394_vm2, %v788_v27  ;;  %v3748_v27 = vld [vmem:[#allocation2 + $0x5c] sm:$0xff] }
 0x154   : > { %v4932_v10 = vadd.f32 %v1186_v46, %v1081_v62  ;;  %v1188_v33 = vpop.f32.mrf.mxu1  ;;  %v1788_v46 = vshrl.u32 %v4907_v20, 16  ;;  %v1989_v31 = vrot.slane %v3748_v27, 1 }
 0x155   : > { %3418 = vmatmul.msk.bf16.gmra.mxu3 %vm1010_vm8, %v3733_v4 }
 0x156   : > { %3485 = vmatmul.msk.bf16.gmra.mxu0 %vm1010_vm8, %v1787_v63  ;;  %v1790_v63 = vor.u32 %v1788_v46, %v1786_v51  ;;  %v1990_v58 = vsel %vm1230_vm10, %v1987_v24, %v1989_v31 }
 0x158   : > { %v1543_v30 = vpop.f32.mrf.mxu3  ;;  %v1795_v59 = vsel %vm897_vm9, %v1790_v63, %v1794_v21 }
 0x159   : > { %v1113_v36 = vpop.f32.mrf.mxu2 }
 0x15a   : > { %v4954_v34 = vadd.f32 %v1218_v61, %v1113_v36  ;;  %v539_v61 = vpack.c.bf16 %v506_v37, %v506_v37 }
 0x15b   : > { %v1083_v44 = vpop.f32.mrf.mxu0 }
 0x15c   : > { %v4962_v53 = vadd.f32 %v1188_v33, %v1083_v44  ;;  %v542_v62 = vshrl.u32 %v539_v61, 16  ;;  %v545_v7 = vshll.u32 %v539_v61, 16  ;;  %v1796_v44 = vshrl.u32 %v4937_v49, 16  ;;  %v3735_v49 = vld [vmem:[#allocation2 + $0x5c] sm:$0xff] }
 0x15e   : > { %3346 = vmatmul.msk.bf16.gmra.mxu2 %vm1010_vm8, %v1249_v45  ;;  %v4969_v4 = vrot.slane %v542_v62, 7  ;;  %v1800_v45 = vshll.u32 %v3748_v27, 16 }
 0x15f   : > { %3510 = vmatmul.msk.bf16.gmra.mxu1 %vm1010_vm8, %v1988_v57  ;;  %v1798_v57 = vor.u32 %v1796_v44, %v1794_v21  ;;  %v1252_v21 = vrot.slane %v4759_v50, 1 }
 0x160   : > { %v1545_v12 = vpop.f32.mrf.mxu3  ;;  %v547_v20 = vor.u32 %v545_v7, %v4969_v4 }
 0x161   : > { %v1313_v56 = vpop.f32.mrf.mxu2 }
 0x162   : > { %v1373_v6 = vadd.f32 %v1313_v56, %v4831_v3  ;;  %v562_v51 = vsel %vm4518_vm5, %v547_v20, %v561_v18  ;;  %v1250_v3 = vrot.slane %v4738_v28, 1  ;;  %v1802_v28 = vrot.slane %v1800_v45, 1  ;;  %v3749_v56 = vld [vmem:[#allocation2 + $0x64] sm:$0xff] }
 0x163   : > { %v1877_v14 = vpop.f32.mrf.mxu0  ;;  %563 = vst [vmem:[#allocation2 + $0x6c] sm:$0xf] %v562_v51  ;;  %v1808_v18 = vshll.u32 %v3749_v56, 16  ;;  %v3736_v45 = vld [vmem:[#allocation2 + $0x64] sm:$0xff] }
 0x164   : > { %v1603_v23 = vadd.f32 %v1543_v30, %v1373_v6  ;;  %v1251_v30 = vsel %vm1230_vm10, %v1248_v5, %v1250_v3  ;;  %v1803_v5 = vsel %vm897_vm9, %v1798_v57, %v1802_v28  ;;  %v1991_v6 = vrot.slane %v3749_v56, 1 }
 0x165   : > { %3419 = vmatmul.msk.bf16.gmra.mxu3 %vm1010_vm8, %v3734_v16  ;;  %v1804_v16 = vshrl.u32 %v3748_v27, 16 }
 0x166   : > { %3486 = vmatmul.msk.bf16.gmra.mxu0 %vm1010_vm8, %v1795_v59  ;;  %v4977_v29 = vadd.f32 %v1877_v14, %v1603_v23  ;;  %v1253_v59 = vsel %vm1230_vm10, %v1250_v3, %v1252_v21  ;;  %v1992_v51 = vsel %vm1230_vm10, %v1989_v31, %v1991_v6  ;;  %v3796_v31 = vld [vmem:[#allocation2 + $0x18] sm:$0xff]  }
 0x168   : > { %v1548_v40 = vpop.f32.mrf.mxu3 }
 0x169   : > { %v1315_v33 = vpop.f32.mrf.mxu2 }
 0x16a   : > { %v1374_v36 = vadd.f32 %v1315_v33, %v4839_v35  ;;  %v1651_v50 = vld [vmem:[#allocation2 + $0x6c] sm:$0x1] }
 0x16b   : > { %v1879_v37 = vpop.f32.mrf.mxu0  ;;  %v1706_v44 = vunpack.c.l.b16 %v1651_v50 }
 0x16c   : > { %v1604_v46 = vadd.f32 %v1545_v12, %v1374_v36  ;;  %v1806_v36 = vor.u32 %v1804_v16, %v1802_v28  ;;  %v1254_v28 = vrot.slane %v4778_v8, 1 }
 0x16d   : > { %v1719_v57 = vpack.c.b16 %v1706_v44, %v1706_v44 }
 0x16e   : > { %3347 = vmatmul.msk.bf16.gmra.mxu2 %vm1010_vm8, %v1251_v30  ;;  %v4986_v52 = vadd.f32 %v1879_v37, %v1604_v46 }
 0x16f   : > { %3511 = vmatmul.msk.bf16.gmra.mxu1 %vm1010_vm8, %v1990_v58 }
 0x170   : > { %v1550_v62 = vpop.f32.mrf.mxu3 }
 0x171   : > { %v1318_v61 = vpop.f32.mrf.mxu2 }
 0x172   : > { %v1375_v35 = vadd.f32 %v1318_v61, %v4847_v47  ;;  %v5010_v61 = vld [vmem:[#allocation2 + $0x20] sm:$0xff] }
 0x173   : > { %v1882_v63 = vpop.f32.mrf.mxu0  ;;  %v2467_v16 = vshll.u32 %v5010_v61, 16 }
 0x174   : > { %v1605_v7 = vadd.f32 %v1548_v40, %v1375_v35  ;;  %v1810_v40 = vrot.slane %v1808_v18, 1  ;;  %v1993_v35 = vrot.slane %v1719_v57, 1 }
 0x175   : > { %3420 = vmatmul.msk.bf16.gmra.mxu3 %vm1010_vm8, %v3735_v49 }
 0x176   : > { %3487 = vmatmul.msk.bf16.gmra.mxu0 %vm1010_vm8, %v1803_v5  ;;  %v4992_v24 = vadd.f32 %v1882_v63, %v1605_v7  ;;  %v1811_v27 = vsel %vm897_vm9, %v1806_v36, %v1810_v40  ;;  %v1255_v7 = vsel %vm1230_vm10, %v1252_v21, %v1254_v28  ;;  %v1994_v8 = vsel %vm1230_vm10, %v1991_v6, %v1993_v35 }
 0x177   : > { %v2469_v36 = vrot.slane %v2467_v16, 1  ;;  %v2471_v35 = vshrl.u32 %v5010_v61, 16 }
 0x178   : > { %v1553_v47 = vpop.f32.mrf.mxu3 }
 0x179   : > { %v1320_v12 = vpop.f32.mrf.mxu2 }
 0x17a   : > { %v1376_v20 = vadd.f32 %v1320_v12, %v4855_v2  ;;  %v1812_v12 = vshrl.u32 %v3749_v56, 16 }
 0x17b   : > { %v1884_v14 = vpop.f32.mrf.mxu0 }
 0x17c   : > { %v1606_v23 = vadd.f32 %v1550_v62, %v1376_v20  ;;  %v1816_v20 = vshll.u32 %v1719_v57, 16 }
 0x17e   : > { %3348 = vmatmul.msk.bf16.gmra.mxu2 %vm1010_vm8, %v1253_v59  ;;  %v5000_v33 = vadd.f32 %v1884_v14, %v1606_v23  ;;  %v1814_v23 = vor.u32 %v1812_v12, %v1810_v40  ;;  %v3797_v40 = vld [vmem:[#allocation2 + $0x18] sm:$0xf0] }
 0x17f   : > { %3512 = vmatmul.msk.bf16.gmra.mxu1 %vm1010_vm8, %v1992_v51  ;;  %v1818_v51 = vrot.slane %v1816_v20, 1 }
 0x180   : > { %v1555_v30 = vpop.f32.mrf.mxu3 }
 0x181   : > { %v1323_v37 = vpop.f32.mrf.mxu2 }
 0x182   : > { %v1377_v2 = vadd.f32 %v1323_v37, %v4863_v15  ;;  %v2462_v15 = vshll.u32 %v3796_v31, 16 }
 0x183   : > { %v1887_v3 = vpop.f32.mrf.mxu0 }
 0x184   : > { %v1607_v46 = vadd.f32 %v1553_v47, %v1377_v2  ;;  %v2460_v47 = vshrl.u32 %v3796_v31, 16  ;;  %v2464_v59 = vrot.slane %v2462_v15, 1  ;;  %v1819_v2 = vsel %vm897_vm9, %v1814_v23, %v1818_v51  ;;  %v3754_v31 = vld [vmem:[#allocation2 + $0x18] sm:$0xff]  ;;  %v5043_v51 = vld [vmem:[#allocation2 + $0x30] sm:$0xff] }
 0x185   : > { %3421 = vmatmul.msk.bf16.gmra.mxu3 %vm1010_vm8, %v3736_v45 }
 0x186   : > { %3488 = vmatmul.msk.bf16.gmra.mxu0 %vm1010_vm8, %v1811_v27  ;;  %v5006_v58 = vadd.f32 %v1887_v3, %v1607_v46  ;;  %v3798_v3 = vld [vmem:[#allocation2 + $0x18] sm:$0xe]  ;;  %v5027_v27 = vld [vmem:[#allocation2 + $0x28] sm:$0xff] }
 0x187   : > { %v3799_v28 = vor.u32 %v3798_v3, %v3797_v40 }
 0x188   : > { %v1558_v5 = vpop.f32.mrf.mxu3 }
 0x189   : > { %v1325_v62 = vpop.f32.mrf.mxu2 }
 0x18a   : > { %v1378_v63 = vadd.f32 %v1325_v62, %v4877_v32  ;;  %v2465_v32 = vor.u32 %v2464_v59, %v2460_v47  ;;  %v2475_v62 = vshll.u32 %v5027_v27, 16 }
 0x18b   : > { %v1889_v49 = vpop.f32.mrf.mxu0 }
 0x18c   : > { %v1608_v14 = vadd.f32 %v1555_v30, %v1378_v63  ;;  %v2470_v6 = vsel %vm897_vm9, %v2465_v32, %v2469_v36  ;;  %v2477_v12 = vrot.slane %v2475_v62, 1 }
 0x18e   : > { %3349 = vmatmul.msk.bf16.gmra.mxu2 %vm1010_vm8, %v1255_v7  ;;  %v5017_v18 = vadd.f32 %v1889_v49, %v1608_v14  ;;  %v2710_v49 = vrot.slane %v5010_v61, 1  ;;  %v2473_v7 = vor.u32 %v2471_v35, %v2469_v36 }
 0x18f   : > { %3513 = vmatmul.msk.bf16.gmra.mxu1 %vm1010_vm8, %v1994_v8 }
 0x190   : > { %v1560_v50 = vpop.f32.mrf.mxu3  ;;  %v2478_v8 = vsel %vm897_vm9, %v2473_v7, %v2477_v12 }
 0x191   : > { %v1328_v21 = vpop.f32.mrf.mxu2 }
 0x192   : > { %v1379_v56 = vadd.f32 %v1328_v21, %v4888_v48 }
 0x193   : > { %v1892_v37 = vpop.f32.mrf.mxu0 }
 0x194   : > { %v1609_v30 = vadd.f32 %v1558_v5, %v1379_v56  ;;  %v2709_v5 = vrot.slane %v3799_v28, 1 }
 0x195   : > { %3642 = vmatmul.msk.bf16.vlgmr.msra.gmra.mxu3 %vm1010_vm8, %v2470_v6 }
 0x196   : > { %3489 = vmatmul.msk.bf16.gmra.mxu0 %vm1010_vm8, %v1819_v2  ;;  %v5024_v44 = vadd.f32 %v1892_v37, %v1609_v30  ;;  %v2711_v59 = vsel %vm1230_vm10, %v2709_v5, %v2710_v49  ;;  %v2483_v37 = vshll.u32 %v5043_v51, 16  ;;  %v2712_v30 = vrot.slane %v5027_v27, 1 }
 0x198   : > { %v1563_v46 = vpop.f32.mrf.mxu3  ;;  %v2485_v40 = vrot.slane %v2483_v37, 1  ;;  %v3757_v37 = vld [vmem:[#allocation2 + $0x30] sm:$0xff] }
 0x199   : > { %v1330_v45 = vpop.f32.mrf.mxu2 }
 0x19a   : > { %v1380_v48 = vadd.f32 %v1330_v45, %v4896_v9 }
 0x19b   : > { %v1894_v57 = vpop.f32.mrf.mxu0 }
 0x19c   : > { %v1610_v15 = vadd.f32 %v1560_v50, %v1380_v48  ;;  %v2479_v50 = vshrl.u32 %v5027_v27, 16 }
 0x19e   : > { %3574 = vmatmul.msk.bf16.vlgmr.msra.gmra.mxu2 %vm1010_vm8, %v3754_v31  ;;  %v5033_v63 = vadd.f32 %v1894_v57, %v1610_v15  ;;  %v2481_v6 = vor.u32 %v2479_v50, %v2477_v12  ;;  %v5059_v15 = vld [vmem:[#allocation2 + $0x38] sm:$0xff] }
 0x19f   : > { %v2491_v12 = vshll.u32 %v5059_v15, 16 }
 0x1a0   : > { %v1565_v47 = vpop.f32.mrf.mxu3  ;;  %v2486_v57 = vsel %vm897_vm9, %v2481_v6, %v2485_v40 }
 0x1a1   : > { %v1333_v20 = vpop.f32.mrf.mxu2 }
 0x1a2   : > { %v1381_v9 = vadd.f32 %v1333_v20, %v4904_v19  ;;  %v3755_v19 = vld [vmem:[#allocation2 + $0x20] sm:$0xff] }
 0x1a3   : > { %v1897_v14 = vpop.f32.mrf.mxu0 }
 0x1a4   : > { %v1611_v16 = vadd.f32 %v1563_v46, %v1381_v9  ;;  %v2713_v46 = vsel %vm1230_vm10, %v2710_v49, %v2712_v30  ;;  %v2487_v49 = vshrl.u32 %v5043_v51, 16  ;;  %v2714_v9 = vrot.slane %v5043_v51, 1  ;;  %v5077_v51 = vld [vmem:[#allocation2 + $0x40] sm:$0xff] }
 0x1a5   : > { %3643 = vmatmul.msk.bf16.gmra.mxu3 %vm1010_vm8, %v2478_v8  ;;  %v5069_v8 = vpop.f32.mrf.mxu1 }
 0x1a6   : > { %3666 = vmatmul.msk.bf16.vlgmr.msra.gmra.mxu0 %vm1010_vm8, %v2711_v59  ;;  %v5040_v23 = vadd.f32 %v1897_v14, %v1611_v16  ;;  %v2493_v14 = vrot.slane %v2491_v12, 1 }
 0x1a8   : > { %v1568_v36 = vpop.f32.mrf.mxu3 }
 0x1a9   : > { %v1335_v61 = vpop.f32.mrf.mxu2 }
 0x1aa   : > { %v1382_v32 = vadd.f32 %v1335_v61, %v4916_v39 }
 0x1ab   : > { %v1899_v21 = vpop.f32.mrf.mxu0 }
 0x1ac   : > { %v1612_v56 = vadd.f32 %v1565_v47, %v1382_v32  ;;  %v2489_v47 = vor.u32 %v2487_v49, %v2485_v40  ;;  %v2715_v32 = vsel %vm1230_vm10, %v2712_v30, %v2714_v9  ;;  %v2495_v30 = vshrl.u32 %v5059_v15, 16 }
 0x1ae   : > { %3575 = vmatmul.msk.bf16.gmra.mxu2 %vm1010_vm8, %v3755_v19  ;;  %v5049_v2 = vadd.f32 %v1899_v21, %v1612_v56  ;;  %v2494_v19 = vsel %vm897_vm9, %v2489_v47, %v2493_v14 }
 0x1b0   : > { %v1570_v39 = vpop.f32.mrf.mxu3 }
 0x1b1   : > { %v1338_v3 = vpop.f32.mrf.mxu2 }
 0x1b2   : > { %v1383_v45 = vadd.f32 %v1338_v3, %v4932_v10  ;;  %v3756_v10 = vld [vmem:[#allocation2 + $0x28] sm:$0xff]  ;;  %v2499_v3 = vshll.u32 %v5077_v51, 16 }
 0x1b3   : > { %v1902_v48 = vpop.f32.mrf.mxu0 }
 0x1b4   : > { %v1613_v31 = vadd.f32 %v1568_v36, %v1383_v45  ;;  %v5082_v45 = vpop.f32.mrf.mxu1 }
 0x1b5   : > { %3644 = vmatmul.msk.bf16.gmra.mxu3 %vm1010_vm8, %v2486_v57 }
 0x1b6   : > { %3667 = vmatmul.msk.bf16.gmra.mxu0 %vm1010_vm8, %v2713_v46  ;;  %v5056_v28 = vadd.f32 %v1902_v48, %v1613_v31  ;;  %v2716_v48 = vrot.slane %v5059_v15, 1  ;;  %v2497_v46 = vor.u32 %v2495_v30, %v2493_v14  ;;  %v2501_v31 = vrot.slane %v2499_v3, 1  ;;  %v5097_v15 = vld [vmem:[#allocation2 + $0x48] sm:$0xff]  ;;  %v3758_v14 = vld [vmem:[#allocation2 + $0x38] sm:$0xff] }
 0x1b8   : > { %v1573_v62 = vpop.f32.mrf.mxu3 }
 0x1b9   : > { %v1340_v27 = vpop.f32.mrf.mxu2 }
 0x1ba   : > { %v1384_v35 = vadd.f32 %v1340_v27, %v4962_v53 }
 0x1bb   : > { %v1904_v5 = vpop.f32.mrf.mxu0 }
 0x1bc   : > { %v1614_v7 = vadd.f32 %v1570_v39, %v1384_v35  ;;  %v5094_v49 = vpop.f32.mrf.mxu1 }
 0x1be   : > { %3576 = vmatmul.msk.bf16.gmra.mxu2 %vm1010_vm8, %v3756_v10  ;;  %v5065_v20 = vadd.f32 %v1904_v5, %v1614_v7  ;;  %v2502_v5 = vsel %vm897_vm9, %v2497_v46, %v2501_v31 }
 0x1c0   : > { %v1575_v53 = vpop.f32.mrf.mxu3 }
 0x1c1   : > { %v1343_v59 = vpop.f32.mrf.mxu2 }
 0x1c2   : > { %v1385_v16 = vadd.f32 %v1343_v59, %v4828_v17 }
 0x1c3   : > { %v1907_v61 = vpop.f32.mrf.mxu0 }
 0x1c4   : > { %v1615_v36 = vadd.f32 %v1573_v62, %v1385_v16  ;;  %v2717_v62 = vsel %vm1230_vm10, %v2714_v9, %v2716_v48  ;;  %v2503_v16 = vshrl.u32 %v5077_v51, 16 }
 0x1c5   : > { %3645 = vmatmul.msk.bf16.gmra.mxu3 %vm1010_vm8, %v2494_v19 }
 0x1c6   : > { %3668 = vmatmul.msk.bf16.gmra.mxu0 %vm1010_vm8, %v2715_v32  ;;  %v5074_v21 = vadd.f32 %v1907_v61, %v1615_v36  ;;  %v2718_v32 = vrot.slane %v5077_v51, 1  ;;  %v2505_v36 = vor.u32 %v2503_v16, %v2501_v31  ;;  %v5115_v51 = vld [vmem:[#allocation2 + $0x50] sm:$0xff] }
 0x1c8   : > { %v1578_v50 = vpop.f32.mrf.mxu3 }
 0x1c9   : > { %v1345_v56 = vpop.f32.mrf.mxu2 }
 0x1ca   : > { %v1386_v17 = vadd.f32 %v1345_v56, %v4836_v25  ;;  %v5106_v56 = vpop.f32.mrf.mxu1 }
 0x1cb   : > { %v1909_v6 = vpop.f32.mrf.mxu0 }
 0x1cc   : > { %v1616_v40 = vadd.f32 %v1575_v53, %v1386_v17  ;;  %v2507_v53 = vshll.u32 %v5097_v15, 16 }
 0x1ce   : > { %3577 = vmatmul.msk.bf16.gmra.mxu2 %vm1010_vm8, %v3757_v37  ;;  %v5085_v39 = vadd.f32 %v1909_v6, %v1616_v40  ;;  %v2509_v19 = vrot.slane %v2507_v53, 1  ;;  %v2719_v6 = vsel %vm1230_vm10, %v2716_v48, %v2718_v32 }
 0x1d0   : > { %v1580_v27 = vpop.f32.mrf.mxu3  ;;  %v2510_v30 = vsel %vm897_vm9, %v2505_v36, %v2509_v19 }
 0x1d1   : > { %v1348_v57 = vpop.f32.mrf.mxu2 }
 0x1d2   : > { %v1387_v25 = vadd.f32 %v1348_v57, %v4844_v42 }
 0x1d3   : > { %v1912_v35 = vpop.f32.mrf.mxu0 }
 0x1d4   : > { %v1617_v10 = vadd.f32 %v1578_v50, %v1387_v25  ;;  %v5118_v25 = vpop.f32.mrf.mxu1 }
 0x1d5   : > { %3646 = vmatmul.msk.bf16.gmra.mxu3 %vm1010_vm8, %v2502_v5  ;;  %v2720_v5 = vrot.slane %v5097_v15, 1 }
 0x1d6   : > { %3669 = vmatmul.msk.bf16.gmra.mxu0 %vm1010_vm8, %v2717_v62  ;;  %v5092_v7 = vadd.f32 %v1912_v35, %v1617_v10  ;;  %v2511_v35 = vshrl.u32 %v5097_v15, 16  ;;  %v2515_v62 = vshll.u32 %v5115_v51, 16  ;;  %v5135_v15 = vld [vmem:[#allocation2 + $0x58] sm:$0xff] }
 0x1d7   : > { %v2527_v1 = vshrl.u32 %v5135_v15, 16 }
 0x1d8   : > { %v1583_v47 = vpop.f32.mrf.mxu3 }
 0x1d9   : > { %v1350_v12 = vpop.f32.mrf.mxu2 }
 0x1da   : > { %v1388_v42 = vadd.f32 %v1350_v12, %v4852_v55  ;;  %v2513_v12 = vor.u32 %v2511_v35, %v2509_v19  ;;  %v499_v35 = vld [vmem:[%s339_s28 + $0x8] sm:$0xff]  ;;  %s3784_s28 = sshll.u32 %s5488_s7, 4  ;;  %s3050_s7 = scalar_lea.sflag [#allocation5], %s4480_s9 }
 0x1db   : > { %v1914_v59 = vpop.f32.mrf.mxu0  ;;  %s3062_s30 = sadd.s32 %s3784_s28, %s3697_s29 }
 0x1dc   : > { %v1618_v9 = vadd.f32 %v1580_v27, %v1388_v42  ;;  %v2517_v42 = vrot.slane %v2515_v62, 1  ;;  %v5129_v36 = vpop.f32.mrf.mxu1  ;;  %s3698_s11 = sshll.u32 %s3062_s30, 3 }
 0x1dd   : > { %s3064_s26 = scalar_lea.hbm %s5498_s15, %s3698_s11 }
 0x1de   : > { %3578 = vmatmul.msk.bf16.gmra.mxu2 %vm1010_vm8, %v3758_v14  ;;  %v5103_v61 = vadd.f32 %v1914_v59, %v1618_v9  ;;  %v2721_v9 = vsel %vm1230_vm10, %v2718_v32, %v2720_v5  ;;  %v2518_v53 = vsel %vm897_vm9, %v2513_v12, %v2517_v42  ;;  %s3067_s21 = sshll.u32 %s3064_s26, 4  ;;  %s3068_s21 = int_to_ptr.hbm [resolvable:$true] %s3067_s21 }
 0x1df   : > { %s4068_s3 = sshra.s32 %s3068_s21, 4  ;;  %s4069_s3 = int_to_ptr.hbm [resolvable:$true] %s4068_s3 }
 0x1e0   : > { %v1585_v50 = vpop.f32.mrf.mxu3  ;;  %s4070_s12 = scalar_lea.hbm %s4069_s3, 128  ;;  %p4075_p8 = scmp.lt.s32.totalorder %s4069_s3, %s5498_s15 }
 0x1e1   : > { %v1353_v17 = vpop.f32.mrf.mxu2  ;;  %p4071_p7 = scmp.ne.s32.totalorder %s4069_s3, %s4070_s12  ;;  %p4076_p9 = scmp.lt.s32.totalorder %s4074_s1, %s4070_s12 }
 0x1e2   : > { %v1389_v55 = vadd.f32 %v1353_v17, %v4860_v11  ;;  %v3759_v11 = vld [vmem:[#allocation2 + $0x40] sm:$0xff] }
 0x1e3   : > { %v1917_v37 = vpop.f32.mrf.mxu0  ;;  %p4072_p3 = pnand %p4071_p7, %p4416_p4  ;;  %p4077_p10 = por %p4076_p9, %p4075_p8 }
 0x1e4   : > { %v1619_v40 = vadd.f32 %v1583_v47, %v1389_v55 }
 0x1e5   : > { %3647 = vmatmul.msk.bf16.gmra.mxu3 %vm1010_vm8, %v2510_v30  ;;  %p4073_p5 = pneg %p4072_p3 }
 0x1e6   : > { %3670 = vmatmul.msk.bf16.gmra.mxu0 %vm1010_vm8, %v2719_v6  ;;  %v5112_v3 = vadd.f32 %v1917_v37, %v1619_v40  ;;  %v2519_v6 = vshrl.u32 %v5115_v51, 16  ;;  %v2523_v40 = vshll.u32 %v5135_v15, 16 }
 0x1e7   : > { %p4078_p12 = pnand %p4077_p10, %p4073_p5 }
 0x1e8   : > { %v1588_v57 = vpop.f32.mrf.mxu3 }
 0x1e9   : > { %v1355_v46 = vpop.f32.mrf.mxu2 }
 0x1ea   : > { %v1390_v31 = vadd.f32 %v1355_v46, %v4874_v22  ;;  %v5143_v46 = vpop.f32.mrf.mxu1 }
 0x1eb   : > { %v1919_v27 = vpop.f32.mrf.mxu0 }
 0x1ec   : > { %v1620_v48 = vadd.f32 %v1585_v50, %v1390_v31  ;;  %v3760_v50 = vld [vmem:[#allocation2 + $0x48] sm:$0xff]  ;;  %v2722_v31 = vrot.slane %v5115_v51, 1 }
 0x1ee   : > { %3579 = vmatmul.msk.bf16.gmra.mxu2 %vm1010_vm8, %v3759_v11  ;;  %v5123_v10 = vadd.f32 %v1919_v27, %v1620_v48  ;;  %v2525_v11 = vrot.slane %v2523_v40, 1  ;;  %v2723_v12 = vsel %vm1230_vm10, %v2720_v5, %v2722_v31 }
 0x1f0   : > { %v1590_v14 = vpop.f32.mrf.mxu3 }
 0x1f1   : > { %v1358_v47 = vpop.f32.mrf.mxu2 }
 0x1f2   : > { %v1391_v22 = vadd.f32 %v1358_v47, %v4885_v43  ;;  %v501_v47 = vmax.f32 %v499_v35, 0.0  ;;  %v5160_v5 = vpop.f32.mrf.mxu1 }
 0x1f3   : > { %v1922_v59 = vpop.f32.mrf.mxu0 }
 0x1f4   : > { %v1621_v16 = vadd.f32 %v1588_v57, %v1391_v22  ;;  %v2521_v57 = vor.u32 %v2519_v6, %v2517_v42 }
 0x1f5   : > { %3648 = vmatmul.msk.bf16.gmra.mxu3 %vm1010_vm8, %v2518_v53 }
 0x1f6   : > { %3671 = vmatmul.msk.bf16.gmra.mxu0 %vm1010_vm8, %v2721_v9  ;;  %v5132_v17 = vadd.f32 %v1922_v59, %v1621_v16  ;;  %v451_v59 = vld [vmem:[#allocation2 + $0x74] sm:$0xf]  ;;  %v507_v9 = vmul.f32 %v4952_v38, %v501_v47  ;;  %v5158_v16 = vld [vmem:[#allocation2 + $0x60] sm:$0xff]  ;;  %v2529_v47 = vor.u32 %v2527_v1, %v2525_v11 }
 0x1f7   : > { %v2531_v40 = vshll.u32 %v5158_v16, 16  ;;  %v2726_v1 = vrot.slane %v5158_v16, 1 }
 0x1f8   : > { %v1593_v55 = vpop.f32.mrf.mxu3  ;;  %v540_v42 = vpack.c.bf16 %v507_v9, %v507_v9 }
 0x1f9   : > { %v1360_v19 = vpop.f32.mrf.mxu2 }
 0x1fa   : > { %v1392_v43 = vadd.f32 %v1360_v19, %v4893_v60  ;;  %v550_v19 = vshrl.u32 %v540_v42, 16  ;;  %v5176_v9 = vpop.f32.mrf.mxu1 }
 0x1fb   : > { %v1924_v32 = vpop.f32.mrf.mxu0 }
 0x1fc   : > { %v1622_v37 = vadd.f32 %v1590_v14, %v1392_v43  ;;  %v2526_v14 = vsel %vm897_vm9, %v2521_v57, %v2525_v11  ;;  %v548_v57 = vrot.slane %v4969_v4, 4  ;;  %v5184_v11 = vld [vmem:[#allocation2 + $0x68] sm:$0xff] }
 0x1fe   : > { %3580 = vmatmul.msk.bf16.gmra.mxu2 %vm1010_vm8, %v3760_v50  ;;  %v5141_v30 = vadd.f32 %v1924_v32, %v1622_v37  ;;  %v552_v32 = vrot.slane %v550_v19, 7  ;;  %v553_v37 = vshll.u32 %v540_v42, 16 }
 0x200   : > { %v1595_v48 = vpop.f32.mrf.mxu3 }
 0x201   : > { %v1363_v60 = vpop.f32.mrf.mxu2 }
 0x202   : > { %v1393_v27 = vadd.f32 %v1363_v60, %v4901_v13  ;;  %v452_v13 = vsel %vm4518_vm5, 0, %v451_v59  ;;  %v555_v60 = vor.u32 %v553_v37, %v552_v32  ;;  %v4212_v37 = vmov 0  }
 0x203   : > { %v1927_v62 = vpop.f32.mrf.mxu0  ;;  %453 = vst [vmem:[#allocation2 + $0x74] sm:$0xf] %v452_v13 }
 0x204   : > { %v1623_v22 = vadd.f32 %v1593_v55, %v1393_v27  ;;  %v3761_v55 = vld [vmem:[#allocation2 + $0x50] sm:$0xff]  ;;  %v557_v27 = vrot.slane %v552_v32, 4  ;;  %v5189_v32 = vpop.f32.mrf.mxu1  ;;  %455 = vst.msk [vmem:[#allocation2 + $0x78] sm:$0xf] %vm394_vm2, %v4212_v37  ;;  %v2114_v37 = vadd.f32 %v5094_v49, %v4992_v24 }
 0x205   : > { %3649 = vmatmul.msk.bf16.gmra.mxu3 %vm1010_vm8, %v2526_v14 }
 0x206   : > { %3672 = vmatmul.msk.bf16.gmra.mxu0 %vm1010_vm8, %v2723_v12  ;;  %v5153_v51 = vadd.f32 %v1927_v62, %v1623_v22  ;;  %v556_v12 = vsel %vm4563_vm7, %v548_v57, %v555_v60  ;;  %v2533_v22 = vrot.slane %v2531_v40, 1  ;;  %v2112_v60 = vadd.f32 %v5069_v8, %v4977_v29 }
 0x207   : > { %564 = vst.msk [vmem:[#allocation2 + $0x70] sm:$0xf] %vm394_vm2, %v556_v12 }
 0x208   : > { %v1598_v38 = vpop.f32.mrf.mxu3  ;;  %v2534_v41 = vsel %vm897_vm9, %v2529_v47, %v2533_v22 }
 0x209   : > { %v1365_v53 = vpop.f32.mrf.mxu2 }
 0x20a   : > { %v1394_v43 = vadd.f32 %v1365_v53, %v4912_v26  ;;  %v565_v62 = vld [vmem:[#allocation2 + $0x74] sm:$0x1]  ;;  %v2724_v26 = vrot.slane %v5135_v15, 1 }
 0x20b   : > { %v1929_v50 = vpop.f32.mrf.mxu0 }
 0x20c   : > { %v1624_v6 = vadd.f32 %v1595_v48, %v1394_v43  ;;  %v566_v48 = vsel %vm4513_vm4, %v557_v27, %v565_v62  ;;  %v2725_v15 = vsel %vm1230_vm10, %v2722_v31, %v2724_v26  ;;  %v3762_v43 = vld [vmem:[#allocation2 + $0x58] sm:$0xff]  ;;  %v2535_v31 = vshrl.u32 %v5158_v16, 16 }
 0x20d   : > { %567 = vst [vmem:[#allocation2 + $0x74] sm:$0x1] %v566_v48  ;;  %v2727_v12 = vsel %vm1230_vm10, %v2724_v26, %v2726_v1  ;;  %v2113_v16 = vadd.f32 %v5082_v45, %v4986_v52 }
 0x20e   : > { %3581 = vmatmul.msk.bf16.gmra.mxu2 %vm1010_vm8, %v3761_v55  ;;  %v5167_v35 = vadd.f32 %v1929_v50, %v1624_v6 }
 0x210   : > { %v1600_v59 = vpop.f32.mrf.mxu3 }
 0x211   : > { %v1368_v4 = vpop.f32.mrf.mxu2 }
 0x212   : > { %v1395_v14 = vadd.f32 %v1368_v4, %v4929_v54  ;;  %v5201_v4 = vpop.f32.mrf.mxu1 }
 0x213   : > { %v1932_v13 = vpop.f32.mrf.mxu0 }
 0x214   : > { %v1625_v42 = vadd.f32 %v1598_v38, %v1395_v14  ;;  %v2539_v38 = vshll.u32 %v5184_v11, 16  ;;  %v5206_v14 = vld [vmem:[#allocation2 + $0x70] sm:$0xff] }
 0x215   : > { %3650 = vmatmul.msk.bf16.gmra.mxu3 %vm1010_vm8, %v2534_v41  ;;  %v2543_v41 = vshrl.u32 %v5184_v11, 16 }
 0x216   : > { %3673 = vmatmul.msk.bf16.gmra.mxu0 %vm1010_vm8, %v2725_v15  ;;  %v5181_v0 = vadd.f32 %v1932_v13, %v1625_v42  ;;  %v2541_v40 = vrot.slane %v2539_v38, 1  ;;  %v3763_v13 = vld [vmem:[#allocation2 + $0x60] sm:$0xff]  ;;  %v2390_v38 = vld [vmem:[#allocation2 + $0x78] sm:$0x1] }
 0x218   : > { %v2616_v19 = vpop.f32.mrf.mxu3 }
 0x219   : > { %v1370_v53 = vpop.f32.mrf.mxu2 }
 0x21a   : > { %v1396_v54 = vadd.f32 %v1370_v53, %v4954_v34  ;;  %v2537_v34 = vor.u32 %v2535_v31, %v2533_v22  ;;  %v2547_v53 = vshll.u32 %v5206_v14, 16 }
 0x21b   : > { %v1934_v55 = vpop.f32.mrf.mxu0 }
 0x21c   : > { %v1626_v50 = vadd.f32 %v1600_v59, %v1396_v54  ;;  %v2542_v47 = vsel %vm897_vm9, %v2537_v34, %v2541_v40 }
 0x21e   : > { %3582 = vmatmul.msk.bf16.gmra.mxu2 %vm1010_vm8, %v3762_v43  ;;  %v5193_v6 = vadd.f32 %v1934_v55, %v1626_v50  ;;  %v2728_v43 = vrot.slane %v5184_v11, 1  ;;  %v2549_v55 = vrot.slane %v2547_v53, 1  ;;  %v5212_v50 = vpop.f32.mrf.mxu1 }
 0x220   : > { %v2618_v27 = vpop.f32.mrf.mxu3 }
 0x221   : > { %v2282_v57 = vpop.f32.mrf.mxu2 }
 0x222   : > { %v2342_v48 = vadd.f32 %v2282_v57, %v2112_v60 }
 0x223   : > { %v2791_v62 = vpop.f32.mrf.mxu0 }
 0x224   : > { %v2676_v22 = vadd.f32 %v2616_v19, %v2342_v48  ;;  %v2545_v19 = vor.u32 %v2543_v41, %v2541_v40  ;;  %v2445_v40 = vunpack.c.l.b16 %v2390_v38  ;;  %v2730_v41 = vrot.slane %v5206_v14, 1 }
 0x225   : > { %3651 = vmatmul.msk.bf16.gmra.mxu3 %vm1010_vm8, %v2542_v47 }
 0x226   : > { %3674 = vmatmul.msk.bf16.gmra.mxu0 %vm1010_vm8, %v2727_v12  ;;  %v2851_v15 = vadd.f32 %v2791_v62, %v2676_v22  ;;  %v2550_v11 = vsel %vm897_vm9, %v2545_v19, %v2549_v55  ;;  %v2115_v12 = vadd.f32 %v5106_v56, %v5000_v33  ;;  %v2458_v24 = vpack.c.b16 %v2445_v40, %v2445_v40  ;;  %v3764_v22 = vld [vmem:[#allocation2 + $0x68] sm:$0xff] }
 0x227   : > { %v2731_v38 = vsel %vm1230_vm10, %v2728_v43, %v2730_v41 }
 0x228   : > { %v2621_v59 = vpop.f32.mrf.mxu3  ;;  %v2875_v52 = vmax.f32 %v2851_v15, 0.0  ;;  %v2555_v15 = vshll.u32 %v2458_v24, 16 }
 0x229   : > { %v2284_v29 = vpop.f32.mrf.mxu2 }
 0x22a   : > { %v2343_v8 = vadd.f32 %v2284_v29, %v2113_v16  ;;  %v2557_v53 = vrot.slane %v2555_v15, 1 }
 0x22b   : > { %v2793_v26 = vpop.f32.mrf.mxu0 }
 0x22c   : > { %v2677_v42 = vadd.f32 %v2618_v27, %v2343_v8  ;;  %v2729_v27 = vsel %vm1230_vm10, %v2726_v1, %v2728_v43  ;;  %v5223_v1 = vpop.f32.mrf.mxu1 }
 0x22e   : > { %v2852_v54 = vadd.f32 %v2793_v26, %v2677_v42  ;;  %3583 = vmatmul.msk.bf16.gmra.mxu2 %vm1010_vm8, %v3763_v13  ;;  %v2551_v26 = vshrl.u32 %v5206_v14, 16  ;;  %v2117_v14 = vadd.f32 %v5129_v36, %v5017_v18  ;;  %v2118_v18 = vadd.f32 %v5143_v46, %v5024_v44 }
 0x230   : > { %v2876_v45 = vmax.f32 %v2852_v54, 0.0  ;;  %v2623_v57 = vpop.f32.mrf.mxu3 }
 0x231   : > { %v2287_v31 = vpop.f32.mrf.mxu2 }
 0x232   : > { %v2899_v34 = vpack.c.bf16 %v2876_v45, %v2875_v52  ;;  %v2344_v62 = vadd.f32 %v2287_v31, %v2114_v37  ;;  %v2116_v52 = vadd.f32 %v5118_v25, %v5006_v58 }
 0x233   : > { %v2796_v60 = vpop.f32.mrf.mxu0 }
 0x234   : > { %3682 = vmatmul.msk.bf16.vlgmr.msra.gmra.mxu1 %vm2919_vm11, %v2899_v34  ;;  %v2678_v48 = vadd.f32 %v2621_v59, %v2344_v62  ;;  %v2553_v59 = vor.u32 %v2551_v26, %v2549_v55  ;;  %v2119_v26 = vadd.f32 %v5160_v5, %v5033_v63 }
 0x235   : > { %3652 = vmatmul.msk.bf16.gmra.mxu3 %vm1010_vm8, %v2550_v11 }
 0x236   : > { %3675 = vmatmul.msk.bf16.gmra.mxu0 %vm1010_vm8, %v2729_v27  ;;  %v2853_v8 = vadd.f32 %v2796_v60, %v2678_v48  ;;  %v2558_v34 = vsel %vm897_vm9, %v2553_v59, %v2557_v53  ;;  %v3765_v27 = vld [vmem:[#allocation2 + $0x70] sm:$0xff]  ;;  %v2732_v48 = vrot.slane %v2458_v24, 1 }
 0x238   : > { %v2626_v16 = vpop.f32.mrf.mxu3  ;;  %v2877_v33 = vmax.f32 %v2853_v8, 0.0  ;;  %v2733_v8 = vsel %vm1230_vm10, %v2730_v41, %v2732_v48 }
 0x239   : > { %v2289_v49 = vpop.f32.mrf.mxu2 }
 0x23a   : > { %v2345_v47 = vadd.f32 %v2289_v49, %v2115_v12 }
 0x23b   : > { %v2798_v29 = vpop.f32.mrf.mxu0 }
 0x23c   : > { %v2679_v13 = vadd.f32 %v2623_v57, %v2345_v47  ;;  %v5233_v57 = vpop.f32.mrf.mxu1 }
 0x23e   : > { %v2854_v42 = vadd.f32 %v2798_v29, %v2679_v13  ;;  %3584 = vmatmul.msk.bf16.gmra.mxu2 %vm1010_vm8, %v3764_v22 }
 0x240   : > { %v2878_v56 = vmax.f32 %v2854_v42, 0.0  ;;  %v2628_v19 = vpop.f32.mrf.mxu3 }
 0x241   : > { %v2292_v54 = vpop.f32.mrf.mxu2 }
 0x242   : > { %v2900_v45 = vpack.c.bf16 %v2878_v56, %v2877_v33  ;;  %v2346_v37 = vadd.f32 %v2292_v54, %v2116_v52 }
 0x243   : > { %v2801_v31 = vpop.f32.mrf.mxu0 }
 0x244   : > { %3683 = vmatmul.msk.bf16.gmra.mxu1 %vm2919_vm11, %v2900_v45  ;;  %v2680_v58 = vadd.f32 %v2626_v16, %v2346_v37  ;;  %v5240_v12 = vpop.f32.mrf.mxu1  ;;  %v2120_v45 = vadd.f32 %v5176_v9, %v5040_v23  ;;  %v2121_v37 = vadd.f32 %v5189_v32, %v5049_v2 }
 0x245   : > { %3653 = vmatmul.msk.bf16.gmra.mxu3 %vm1010_vm8, %v2558_v34 }
 0x246   : > { %3676 = vmatmul.msk.bf16.gmra.mxu0 %vm1010_vm8, %v2731_v38  ;;  %v2855_v62 = vadd.f32 %v2801_v31, %v2680_v58 }
 0x248   : > { %v2631_v60 = vpop.f32.mrf.mxu3  ;;  %v2879_v49 = vmax.f32 %v2855_v62, 0.0 }
 0x249   : > { %v2294_v25 = vpop.f32.mrf.mxu2 }
 0x24a   : > { %v2347_v55 = vadd.f32 %v2294_v25, %v2117_v14 }
 0x24b   : > { %v2803_v43 = vpop.f32.mrf.mxu0 }
 0x24c   : > { %v2681_v11 = vadd.f32 %v2628_v19, %v2347_v55  ;;  %v5249_v15 = vpop.f32.mrf.mxu1 }
 0x24e   : > { %v2856_v40 = vadd.f32 %v2803_v43, %v2681_v11  ;;  %3585 = vmatmul.msk.bf16.gmra.mxu2 %vm1010_vm8, %v3765_v27 }
 0x250   : > { %v2880_v47 = vmax.f32 %v2856_v40, 0.0  ;;  %v2633_v16 = vpop.f32.mrf.mxu3  ;;  %v2122_v40 = vadd.f32 %v5201_v4, %v5056_v28 }
 0x251   : > { %v2297_v22 = vpop.f32.mrf.mxu2 }
 0x252   : > { %v2901_v36 = vpack.c.bf16 %v2880_v47, %v2879_v49  ;;  %v2348_v13 = vadd.f32 %v2297_v22, %v2118_v18  ;;  %v2123_v22 = vadd.f32 %v5212_v50, %v5065_v20  ;;  %v2125_v50 = vadd.f32 %v5233_v57, %v5085_v39 }
 0x253   : > { %v2806_v29 = vpop.f32.mrf.mxu0 }
 0x254   : > { %3684 = vmatmul.msk.bf16.gmra.mxu1 %vm2919_vm11, %v2901_v36  ;;  %v2682_v24 = vadd.f32 %v2631_v60, %v2348_v13  ;;  %v5253_v38 = vpop.f32.mrf.mxu1 }
 0x256   : > { %3677 = vmatmul.msk.bf16.gmra.mxu0 %vm1010_vm8, %v2733_v8  ;;  %v2857_v46 = vadd.f32 %v2806_v29, %v2682_v24 }
 0x258   : > { %v2636_v56 = vpop.f32.mrf.mxu3  ;;  %v2881_v54 = vmax.f32 %v2857_v46, 0.0 }
 0x259   : > { %v2299_v42 = vpop.f32.mrf.mxu2 }
 0x25a   : > { %v2349_v33 = vadd.f32 %v2299_v42, %v2119_v26 }
 0x25b   : > { %v2808_v44 = vpop.f32.mrf.mxu0 }
 0x25c   : > { %v2683_v59 = vadd.f32 %v2633_v16, %v2349_v33  ;;  %v5258_v43 = vpop.f32.mrf.mxu1 }
 0x25e   : > { %v2858_v53 = vadd.f32 %v2808_v44, %v2683_v59 }
 0x260   : > { %v2882_v41 = vmax.f32 %v2858_v53, 0.0  ;;  %v2638_v31 = vpop.f32.mrf.mxu3 }
 0x261   : > { %v2302_v52 = vpop.f32.mrf.mxu2 }
 0x262   : > { %v2902_v19 = vpack.c.bf16 %v2882_v41, %v2881_v54  ;;  %v2350_v5 = vadd.f32 %v2302_v52, %v2120_v45 }
 0x263   : > { %v2811_v63 = vpop.f32.mrf.mxu0 }
 0x264   : > { %3685 = vmatmul.msk.bf16.gmra.mxu1 %vm2919_vm11, %v2902_v19  ;;  %v2684_v34 = vadd.f32 %v2636_v56, %v2350_v5  ;;  %v5263_v32 = vpop.f32.mrf.mxu1  ;;  %v2124_v56 = vadd.f32 %v5223_v1, %v5074_v21 }
 0x266   : > { %v2859_v60 = vadd.f32 %v2811_v63, %v2684_v34  ;;  %v2126_v34 = vadd.f32 %v5240_v12, %v5092_v7 }
 0x268   : > { %v2641_v25 = vpop.f32.mrf.mxu3  ;;  %v2883_v9 = vmax.f32 %v2859_v60, 0.0 }
 0x269   : > { %v2304_v14 = vpop.f32.mrf.mxu2 }
 0x26a   : > { %v2351_v58 = vadd.f32 %v2304_v14, %v2121_v37 }
 0x26b   : > { %v2813_v55 = vpop.f32.mrf.mxu0 }
 0x26c   : > { %v2685_v27 = vadd.f32 %v2638_v31, %v2351_v58  ;;  %v5267_v42 = vpop.f32.mrf.mxu1 }
 0x26e   : > { %v2860_v23 = vadd.f32 %v2813_v55, %v2685_v27  ;;  %v2127_v55 = vadd.f32 %v5249_v15, %v5103_v61  ;;  %v2129_v15 = vadd.f32 %v5258_v43, %v5123_v10  ;;  %v2130_v10 = vadd.f32 %v5263_v32, %v5132_v17 }
 0x270   : > { %v2884_v62 = vmax.f32 %v2860_v23, 0.0  ;;  %v2643_v49 = vpop.f32.mrf.mxu3 }
 0x271   : > { %v2307_v11 = vpop.f32.mrf.mxu2 }
 0x272   : > { %v2903_v48 = vpack.c.bf16 %v2884_v62, %v2883_v9  ;;  %v2352_v2 = vadd.f32 %v2307_v11, %v2122_v40 }
 0x273   : > { %v2816_v47 = vpop.f32.mrf.mxu0 }
 0x274   : > { %3686 = vmatmul.msk.bf16.gmra.mxu1 %vm2919_vm11, %v2903_v48  ;;  %v2686_v18 = vadd.f32 %v2641_v25, %v2352_v2  ;;  %v5274_v45 = vpop.f32.mrf.mxu1  ;;  %v2128_v2 = vadd.f32 %v5253_v38, %v5112_v3 }
 0x276   : > { %v2861_v13 = vadd.f32 %v2816_v47, %v2686_v18 }
 0x278   : > { %v2646_v29 = vpop.f32.mrf.mxu3  ;;  %v2885_v28 = vmax.f32 %v2861_v13, 0.0 }
 0x279   : > { %v2309_v36 = vpop.f32.mrf.mxu2 }
 0x27a   : > { %v2353_v16 = vadd.f32 %v2309_v36, %v2123_v22 }
 0x27b   : > { %v2818_v8 = vpop.f32.mrf.mxu0 }
 0x27c   : > { %v2687_v26 = vadd.f32 %v2643_v49, %v2353_v16  ;;  %v5279_v57 = vpop.f32.mrf.mxu1 }
 0x27e   : > { %v2862_v24 = vadd.f32 %v2818_v8, %v2687_v26 }
 0x280   : > { %v2886_v4 = vmax.f32 %v2862_v24, 0.0  ;;  %v2648_v46 = vpop.f32.mrf.mxu3 }
 0x281   : > { %v2312_v33 = vpop.f32.mrf.mxu2 }
 0x282   : > { %v2904_v44 = vpack.c.bf16 %v2886_v4, %v2885_v28  ;;  %v2354_v20 = vadd.f32 %v2312_v33, %v2124_v56 }
 0x283   : > { %v2821_v59 = vpop.f32.mrf.mxu0 }
 0x284   : > { %3687 = vmatmul.msk.bf16.gmra.mxu1 %vm2919_vm11, %v2904_v44  ;;  %v2688_v53 = vadd.f32 %v2646_v29, %v2354_v20  ;;  %v5283_v7 = vpop.f32.mrf.mxu1 }
 0x286   : > { %v2863_v31 = vadd.f32 %v2821_v59, %v2688_v53 }
 0x288   : > { %v2651_v52 = vpop.f32.mrf.mxu3  ;;  %v2887_v21 = vmax.f32 %v2863_v31, 0.0 }
 0x289   : > { %v2314_v54 = vpop.f32.mrf.mxu2 }
 0x28a   : > { %v2355_v41 = vadd.f32 %v2314_v54, %v2125_v50  ;;  %v2131_v54 = vadd.f32 %v5267_v42, %v5141_v30  ;;  %v2132_v30 = vadd.f32 %v5274_v45, %v5153_v51 }
 0x28b   : > { %v2823_v19 = vpop.f32.mrf.mxu0 }
 0x28c   : > { %v2689_v63 = vadd.f32 %v2648_v46, %v2355_v41  ;;  %v5290_v29 = vpop.f32.mrf.mxu1  ;;  %v3945_v46 = vld [vmem:[%s4486_s10] sm:$0xff] }
 0x28e   : > { %v2864_v5 = vadd.f32 %v2823_v19, %v2689_v63  ;;  %v3946_v19 = vld [vmem:[%s4486_s10 + $0x8] sm:$0xff] }
 0x290   : > { %v2888_v1 = vmax.f32 %v2864_v5, 0.0  ;;  %v2653_v58 = vpop.f32.mrf.mxu3 }
 0x291   : > { %v2317_v37 = vpop.f32.mrf.mxu2 }
 0x292   : > { %v2905_v14 = vpack.c.bf16 %v2888_v1, %v2887_v21  ;;  %v2356_v39 = vadd.f32 %v2317_v37, %v2126_v34 }
 0x293   : > { %v2826_v25 = vpop.f32.mrf.mxu0 }
 0x294   : > { %3688 = vmatmul.msk.bf16.gmra.mxu1 %vm2919_vm11, %v2905_v14  ;;  %v2690_v60 = vadd.f32 %v2651_v52, %v2356_v39 }
 0x296   : > { %v2865_v11 = vadd.f32 %v2826_v25, %v2690_v60 }
 0x298   : > { %v2656_v9 = vpop.f32.mrf.mxu3  ;;  %v2889_v12 = vmax.f32 %v2865_v11, 0.0 }
 0x299   : > { %v2319_v27 = vpop.f32.mrf.mxu2 }
 0x29a   : > { %v2357_v23 = vadd.f32 %v2319_v27, %v2127_v55  ;;  %v2133_v27 = vadd.f32 %v5279_v57, %v5167_v35  ;;  %v2134_v35 = vadd.f32 %v5283_v7, %v5181_v0 }
 0x29b   : > { %v2828_v62 = vpop.f32.mrf.mxu0 }
 0x29c   : > { %v2691_v40 = vadd.f32 %v2653_v58, %v2357_v23 }
 0x29e   : > { %v2866_v48 = vadd.f32 %v2828_v62, %v2691_v40  ;;  %v3947_v40 = vld [vmem:[%s4486_s10 + $0x10] sm:$0xff] }
 0x2a0   : > { %v2890_v49 = vmax.f32 %v2866_v48, 0.0  ;;  %v2658_v18 = vpop.f32.mrf.mxu3 }
 0x2a1   : > { %v2322_v47 = vpop.f32.mrf.mxu2 }
 0x2a2   : > { %v2906_v22 = vpack.c.bf16 %v2890_v49, %v2889_v12  ;;  %v2358_v61 = vadd.f32 %v2322_v47, %v2128_v2 }
 0x2a3   : > { %v2831_v36 = vpop.f32.mrf.mxu0 }
 0x2a4   : > { %3689 = vmatmul.msk.bf16.gmra.mxu1 %vm2919_vm11, %v2906_v22  ;;  %v2692_v16 = vadd.f32 %v2656_v9, %v2358_v61  ;;  %v3948_v61 = vld [vmem:[%s4486_s10 + $0x18] sm:$0xff] }
 0x2a6   : > { %v2867_v28 = vadd.f32 %v2831_v36, %v2692_v16 }
 0x2a8   : > { %v2661_v26 = vpop.f32.mrf.mxu3  ;;  %v2891_v4 = vmax.f32 %v2867_v28, 0.0 }
 0x2a9   : > { %v2324_v8 = vpop.f32.mrf.mxu2 }
 0x2aa   : > { %v2359_v13 = vadd.f32 %v2324_v8, %v2129_v15 }
 0x2ab   : > { %v2833_v24 = vpop.f32.mrf.mxu0 }
 0x2ac   : > { %v2693_v3 = vadd.f32 %v2658_v18, %v2359_v13  ;;  %v2135_v13 = vadd.f32 %v5290_v29, %v5193_v6  ;;  %v3949_v6 = vld [vmem:[%s4486_s10 + $0x20] sm:$0xff] }
 0x2ae   : > { %v2868_v38 = vadd.f32 %v2833_v24, %v2693_v3 }
 0x2b0   : > { %v2892_v33 = vmax.f32 %v2868_v38, 0.0  ;;  %v2663_v20 = vpop.f32.mrf.mxu3 }
 0x2b1   : > { %v2327_v56 = vpop.f32.mrf.mxu2  ;;  %v2965_v44 = vpop.f32.mrf.mxu1 }
 0x2b2   : > { %v2907_v43 = vpack.c.bf16 %v2892_v33, %v2891_v4  ;;  %v3017_v59 = vadd.f32 %v3945_v46, %v2965_v44  ;;  %v2360_v53 = vadd.f32 %v2327_v56, %v2130_v10 }
 0x2b3   : > { %v2836_v50 = vpop.f32.mrf.mxu0 }
 0x2b4   : > { %3033 = vst.msk [vmem:[%s5297_s5] sm:$0xff] %vm1010_vm8, %v3017_v59  ;;  %3690 = vmatmul.msk.bf16.gmra.mxu1 %vm2919_vm11, %v2907_v43  ;;  %v2694_v41 = vadd.f32 %v2661_v26, %v2360_v53  ;;  %v3950_v59 = vld [vmem:[%s4486_s10 + $0x28] sm:$0xff] }
 0x2b6   : > { %v2869_v5 = vadd.f32 %v2836_v50, %v2694_v41 }
 0x2b8   : > { %v2666_v1 = vpop.f32.mrf.mxu3  ;;  %v2893_v34 = vmax.f32 %v2869_v5, 0.0 }
 0x2b9   : > { %v2329_v17 = vpop.f32.mrf.mxu2  ;;  %v2967_v32 = vpop.f32.mrf.mxu1 }
 0x2ba   : > { %v2361_v52 = vadd.f32 %v2329_v17, %v2131_v54  ;;  %v3018_v31 = vadd.f32 %v3946_v19, %v2967_v32  ;;  %v3951_v54 = vld [vmem:[%s4486_s10 + $0x30] sm:$0xff]  ;;  %v3952_v32 = vld [vmem:[%s4486_s10 + $0x38] sm:$0xff] }
 0x2bb   : > { %v2838_v63 = vpop.f32.mrf.mxu0 }
 0x2bc   : > { %v2695_v21 = vadd.f32 %v2663_v20, %v2361_v52  ;;  %3034 = vst.msk [vmem:[%s5297_s5 + $0x8] sm:$0xff] %vm1010_vm8, %v3018_v31 }
 0x2be   : > { %v2870_v37 = vadd.f32 %v2838_v63, %v2695_v21  ;;  %v3953_v63 = vld [vmem:[%s4486_s10 + $0x40] sm:$0xff] }
 0x2c0   : > { %v2894_v14 = vmax.f32 %v2870_v37, 0.0  ;;  %v2668_v60 = vpop.f32.mrf.mxu3 }
 0x2c1   : > { %v2332_v58 = vpop.f32.mrf.mxu2  ;;  %v2970_v25 = vpop.f32.mrf.mxu1 }
 0x2c2   : > { %v2908_v42 = vpack.c.bf16 %v2894_v14, %v2893_v34  ;;  %v2362_v55 = vadd.f32 %v2332_v58, %v2132_v30  ;;  %v3955_v58 = vld [vmem:[%s4486_s10 + $0x50] sm:$0xff] }
 0x2c3   : > { %v2841_v39 = vpop.f32.mrf.mxu0 }
 0x2c4   : > { %3691 = vmatmul.msk.bf16.gmra.mxu1 %vm2919_vm11, %v2908_v42  ;;  %v2696_v23 = vadd.f32 %v2666_v1, %v2362_v55  ;;  %v3954_v1 = vld [vmem:[%s4486_s10 + $0x48] sm:$0xff]  ;;  %v3956_v42 = vld [vmem:[%s4486_s10 + $0x58] sm:$0xff] }
 0x2c6   : > { %v2871_v51 = vadd.f32 %v2841_v39, %v2696_v23 }
 0x2c8   : > { %v2895_v47 = vmax.f32 %v2871_v51, 0.0  ;;  %v2671_v22 = vpop.f32.mrf.mxu3 }
 0x2c9   : > { %v2334_v9 = vpop.f32.mrf.mxu2  ;;  %v2971_v62 = vpop.f32.mrf.mxu1 }
 0x2ca   : > { %v2363_v11 = vadd.f32 %v2334_v9, %v2133_v27  ;;  %v3019_v48 = vadd.f32 %v3947_v40, %v2971_v62  ;;  %v3957_v27 = vld [vmem:[%s4486_s10 + $0x60] sm:$0xff]  ;;  %v3958_v62 = vld [vmem:[%s4486_s10 + $0x68] sm:$0xff] }
 0x2cb   : > { %v2843_v12 = vpop.f32.mrf.mxu0 }
 0x2cc   : > { %v2697_v45 = vadd.f32 %v2668_v60, %v2363_v11  ;;  %3035 = vst.msk [vmem:[%s5297_s5 + $0x10] sm:$0xff] %vm1010_vm8, %v3019_v48 }
 0x2ce   : > { %v2872_v49 = vadd.f32 %v2843_v12, %v2697_v45  ;;  %v3959_v12 = vld [vmem:[%s4486_s10 + $0x70] sm:$0xff] }
 0x2d0   : > { %v2896_v2 = vmax.f32 %v2872_v49, 0.0  ;;  %v2673_v0 = vpop.f32.mrf.mxu3  ;;  %v3960_v49 = vld [vmem:[%s4486_s10 + $0x78] sm:$0xff] }
 0x2d1   : > { %v2337_v18 = vpop.f32.mrf.mxu2  ;;  %v2974_v36 = vpop.f32.mrf.mxu1 }
 0x2d2   : > { %v2909_v57 = vpack.c.bf16 %v2896_v2, %v2895_v47  ;;  %v3020_v15 = vadd.f32 %v3948_v61, %v2974_v36  ;;  %v2364_v8 = vadd.f32 %v2337_v18, %v2134_v35 }
 0x2d3   : > { %v2846_v16 = vpop.f32.mrf.mxu0 }
 0x2d4   : > { %3036 = vst.msk [vmem:[%s5297_s5 + $0x18] sm:$0xff] %vm1010_vm8, %v3020_v15  ;;  %3692 = vmatmul.msk.bf16.gmra.mxu1 %vm2919_vm11, %v2909_v57  ;;  %v2698_v26 = vadd.f32 %v2671_v22, %v2364_v8 }
 0x2d6   : > { %v2873_v7 = vadd.f32 %v2846_v16, %v2698_v26 }
 0x2d8   : > { %v2897_v56 = vmax.f32 %v2873_v7, 0.0 }
 0x2d9   : > { %v2339_v24 = vpop.f32.mrf.mxu2  ;;  %v2976_v28 = vpop.f32.mrf.mxu1 }
 0x2da   : > { %v2365_v3 = vadd.f32 %v2339_v24, %v2135_v13 }
 0x2db   : > { %v2848_v4 = vpop.f32.mrf.mxu0 }
 0x2dc   : > { %v2699_v38 = vadd.f32 %v2673_v0, %v2365_v3 }
 0x2de   : > { %v2874_v33 = vadd.f32 %v2848_v4, %v2699_v38 }
 0x2e0   : > { %v2898_v44 = vmax.f32 %v2874_v33, 0.0 }
 0x2e1   : > { %v2978_v10 = vpop.f32.mrf.mxu1 }
 0x2e2   : > { %v2910_v43 = vpack.c.bf16 %v2898_v44, %v2897_v56  ;;  %v3021_v29 = vadd.f32 %v3949_v6, %v2978_v10 }
 0x2e4   : > { %3037 = vst.msk [vmem:[%s5297_s5 + $0x20] sm:$0xff] %vm1010_vm8, %v3021_v29  ;;  %3693 = vmatmul.msk.bf16.gmra.mxu1 %vm2919_vm11, %v2910_v43 }
 0x2e9   : > { %v2980_v46 = vpop.f32.mrf.mxu1 }
 0x2ea   : > { %v3022_v20 = vadd.f32 %v3950_v59, %v2980_v46 }
 0x2ec   : > { %3038 = vst.msk [vmem:[%s5297_s5 + $0x28] sm:$0xff] %vm1010_vm8, %v3022_v20 }
 0x2f1   : > { %v2983_v50 = vpop.f32.mrf.mxu1 }
 0x2f9   : > { %v2984_v53 = vpop.f32.mrf.mxu1 }
 0x2fa   : > { %v3023_v41 = vadd.f32 %v3951_v54, %v2984_v53 }
 0x2fc   : > { %3039 = vst.msk [vmem:[%s5297_s5 + $0x30] sm:$0xff] %vm1010_vm8, %v3023_v41 }
 0x301   : > { %v2987_v17 = vpop.f32.mrf.mxu1 }
 0x302   : > { %v3024_v52 = vadd.f32 %v3952_v32, %v2987_v17 }
 0x304   : > { %3040 = vst.msk [vmem:[%s5297_s5 + $0x38] sm:$0xff] %vm1010_vm8, %v3024_v52 }
 0x309   : > { %v2989_v19 = vpop.f32.mrf.mxu1 }
 0x311   : > { %v2991_v31 = vpop.f32.mrf.mxu1 }
 0x312   : > { %v3025_v5 = vadd.f32 %v3953_v63, %v2991_v31 }
 0x314   : > { %3041 = vst.msk [vmem:[%s5297_s5 + $0x40] sm:$0xff] %vm1010_vm8, %v3025_v5 }
 0x319   : > { %v2993_v21 = vpop.f32.mrf.mxu1 }
 0x31a   : > { %v3026_v37 = vadd.f32 %v3954_v1, %v2993_v21 }
 0x31c   : > { %3042 = vst.msk [vmem:[%s5297_s5 + $0x48] sm:$0xff] %vm1010_vm8, %v3026_v37 }
 0x321   : > { %v2996_v34 = vpop.f32.mrf.mxu1 }
 0x329   : > { %v2997_v14 = vpop.f32.mrf.mxu1 }
 0x32a   : > { %v3027_v25 = vadd.f32 %v3955_v58, %v2997_v14 }
 0x32c   : > { %3043 = vst.msk [vmem:[%s5297_s5 + $0x50] sm:$0xff] %vm1010_vm8, %v3027_v25 }
 0x331   : > { %v3000_v30 = vpop.f32.mrf.mxu1 }
 0x332   : > { %v3028_v39 = vadd.f32 %v3956_v42, %v3000_v30 }
 0x334   : > { %3044 = vst.msk [vmem:[%s5297_s5 + $0x58] sm:$0xff] %vm1010_vm8, %v3028_v39 }
 0x339   : > { %v3002_v55 = vpop.f32.mrf.mxu1 }
 0x341   : > { %v3004_v60 = vpop.f32.mrf.mxu1 }
 0x342   : > { %v3029_v23 = vadd.f32 %v3957_v27, %v3004_v60 }
 0x344   : > { %3045 = vst.msk [vmem:[%s5297_s5 + $0x60] sm:$0xff] %vm1010_vm8, %v3029_v23 }
 0x349   : > { %v3006_v9 = vpop.f32.mrf.mxu1 }
 0x34a   : > { %v3030_v11 = vadd.f32 %v3958_v62, %v3006_v9 }
 0x34c   : > { %3046 = vst.msk [vmem:[%s5297_s5 + $0x68] sm:$0xff] %vm1010_vm8, %v3030_v11 }
 0x351   : > { %v3009_v40 = vpop.f32.mrf.mxu1 }
 0x359   : > { %v3010_v48 = vpop.f32.mrf.mxu1 }
 0x35a   : > { %v3031_v51 = vadd.f32 %v3959_v12, %v3010_v48 }
 0x35c   : > { %3047 = vst.msk [vmem:[%s5297_s5 + $0x70] sm:$0xff] %vm1010_vm8, %v3031_v51 }
 0x361   : > { %v3013_v45 = vpop.f32.mrf.mxu1 }
 0x362   : > { %v3032_v47 = vadd.f32 %v3960_v49, %v3013_v45 }
 0x364   : > { %3048 = vst.msk [vmem:[%s5297_s5 + $0x78] sm:$0xff] %vm1010_vm8, %v3032_v47 }
 0x365   : > { %4081 = shalt.err (!%p4078_p12)
}
 0x366   : > { %s4213_s9 = smov 128   ;;  %s4214_s10 = smov 8  }
 0x367   : > { %3810 = dma.vmem_to_hbm [thread:$0]  (%p4416_p4), %s3066_s18, 2048, %s3068_s21, %s3050_s7, %s4213_s9, %s4213_s9, %s4214_s10  }
 0x369   : > { %v3015_v2 = vpop.f32.mrf.mxu1 }
 0x36a PF: > { %s5499_s5 = sld [smem:[#allocation15_spill]]  ;;  %p3827_p13 = scmp.ge.s32.totalorder %s4208_s6, 2 }
 0x36c   : > { %p3823_p1 = pnand %p3827_p13, %p4420_p6 }
 0x36e   : > { %p3824_p2 = pneg %p3823_p1 }
 0x370   : > { %s3082_s28 = sand.u32 1, %s5499_s5  }
 0x371   : > { %s3083_s29 = scalar_lea.sflag [#allocation5], %s3082_s28 }
 0x372   : > { %4151 = dma.done.wait (%p3824_p2), %s3083_s29, 2048  }
 0x373   : > { %4153 = vsyncadd (%p3824_p2), %s3083_s29, 4294965248  ;;  %s24_s6 = sadd.s32 1, %s4208_s6   ;;  %s5502_s16 = sld [smem:[#allocation14_spill]] }
 0x374   : > { %p5382_p0 = scmp.ge.s32.totalorder %s24_s6, 6   ;;  %s5503_s23 = sld [smem:[#allocation24_spill]] }
 0x375   : > { %s5504_s11 = sld [smem:[#allocation16_spill]]  ;;  %s5511_s18 = smov %s4160_s19 }
 0x376   : > { %s5505_s26 = sld [smem:[#allocation25_spill]]  ;;  %s5512_s19 = smov %s4164_s20 }
 0x377   : > { %s5506_s27 = sld [smem:[#allocation19_spill]]  ;;  %s5513_s20 = smov %s4463_s13 }
 0x378   : > { %s5507_s28 = sld [smem:[#allocation20_spill]]  ;;  %s5514_s21 = smov %s4172_s22 }
 0x379   : > { %s5508_s29 = sld [smem:[#allocation21_spill]]  ;;  %s5515_s22 = smov %s5502_s16 }
 0x37a   : > { %s5509_s4 = sld [smem:[#allocation22_spill]]  ;;  %s5516_s24 = smov %s4184_s25 }
 0x37b   : > { %s5517_s25 = smov %s5504_s11 }
 0x37c   :  { %23 = sbr.rel (!%p5382_p0) target bundleno = 18 (0x12), region = 117 }
 0x380   : > { %s5518_s30 = smov %s5509_s4 }
 0x381   :  { %3089 = vsyncpa [#allocation4], 1 }
 0x382   :  { %3091 = vsyncpa [#allocation4 + $0x1], 1 }
 0x383   :  { %3092 = vsyncpa [#allocation7], 1 }
 0x384   :  { %3094 = vsyncpa [#allocation7 + $0x1], 1 }
 0x385   :  { %3095 = vsyncpa [#allocation5], 1 }
 0x386   :  { %3097 = vsyncpa [#allocation5 + $0x1], 1 }

</bundles_post_ra>
